<compile_context>
chip_gen: v6e
topology: v6e:2x2x1
jax: 0.10.0
libtpu: 0.0.40
codegen_flags: <defaults>
</compile_context>

<pallas_src>
import functools
import math

import jax
import jax.numpy as jnp
from jax.experimental import pallas as pl
from jax.experimental.pallas import tpu as pltpu


# ---------------------------- fused forward kernel ----------------------------

def _layernorm(v, g, b, eps):
    mu = jnp.mean(v, axis=-1, keepdims=True)
    vc = v - mu
    var = jnp.mean(vc * vc, axis=-1, keepdims=True)
    return vc * jax.lax.rsqrt(var + eps) * g + b


def _gelu(v):
    # tanh-approximate GELU (EUP tanh).
    # TODO(synk): HF BertModel default is the erf-based gelu; tanh approx deviates slightly.
    c = jnp.float32(math.sqrt(2.0 / math.pi))
    return 0.5 * v * (1.0 + jnp.tanh(c * (v + 0.044715 * v * v * v)))


def _fused_encoder_kernel(
    x_ref, mask_ref, eg_ref, eb_ref,
    wqkv_ref, bqkv_ref, wo_ref, bo_ref, ln1g_ref, ln1b_ref,
    w1_ref, b1_ref, w2_ref, b2_ref, ln2g_ref, ln2b_ref,
    clsw_ref, clsb_ref,
    cls_out_ref, logits_ref,
    *, num_layers, num_heads, head_dim, hidden, eps, scale,
):
    # One grid step == one example of the batch (grid axis is "parallel" -> 2 TCs on v7x).
    x = x_ref[0]            # (S, H) summed embeddings
    add_mask = mask_ref[0]  # (1, S) additive key mask, broadcast over query rows

    # Embedding LayerNorm — no dummy residual input.
    h = _layernorm(x, eg_ref[...], eb_ref[...], eps)

    for l in range(num_layers):            # L is static & tiny -> unrolled, weights stay resident
        # ----- fused QKV projection: one MXU pass over the (H, 3H) weight -----
        qkv = jnp.dot(h, wqkv_ref[l], preferred_element_type=jnp.float32) + bqkv_ref[l]
        q = qkv[:, :hidden]
        k = qkv[:, hidden:2 * hidden]
        v = qkv[:, 2 * hidden:]

        # ----- per-head attention, context re-assembled lane-dense as (S, H) -----
        ctx_heads = []
        for hh in range(num_heads):
            sl = slice(hh * head_dim, (hh + 1) * head_dim)
            qh, kh, vh = q[:, sl], k[:, sl], v[:, sl]
            s = jnp.dot(qh, kh.T, preferred_element_type=jnp.float32) * scale + add_mask
            s = s - jnp.max(s, axis=-1, keepdims=True)
            p = jnp.exp(s)
            p = p * pl.reciprocal(jnp.sum(p, axis=-1, keepdims=True), approx=True)
            ctx_heads.append(jnp.dot(p, vh, preferred_element_type=jnp.float32))
        ctx = jnp.concatenate(ctx_heads, axis=-1)          # (S, H)

        attn_out = jnp.dot(ctx, wo_ref[l], preferred_element_type=jnp.float32) + bo_ref[l]
        h1 = _layernorm(attn_out + h, ln1g_ref[l], ln1b_ref[l], eps)

        ff = _gelu(jnp.dot(h1, w1_ref[l], preferred_element_type=jnp.float32) + b1_ref[l])
        ff = jnp.dot(ff, w2_ref[l], preferred_element_type=jnp.float32) + b2_ref[l]
        h = _layernorm(ff + h1, ln2g_ref[l], ln2b_ref[l], eps)

    # CLS token of the last hidden state + fused, lane-dense (128-wide padded) classifier head.
    cls = h[0:1, :]                                         # (1, H) == last_hidden_state[:, 0, :]
    cls_out_ref[0] = cls.astype(cls_out_ref.dtype)
    logits_ref[0] = (
        jnp.dot(cls, clsw_ref[...], preferred_element_type=jnp.float32) + clsb_ref[...]
    ).astype(logits_ref.dtype)


# ---------------------------- params (synthetic, deterministic) ----------------------------

_CLS_PAD = 128  # lane-dense padded classifier width (sliced back to no_labels on host)


def init_params(key, cfg):
    H, I, L = cfg["hidden"], cfg["intermediate"], cfg["layers"]
    V, P, C = cfg["vocab"], cfg["max_pos"], cfg["no_labels"]
    ks = iter(jax.random.split(key, 16))

    nrm = lambda k, shape: (0.02 * jax.random.normal(k, shape)).astype(jnp.float32)
    zeros = lambda s: jnp.zeros(s, jnp.float32)
    ones = lambda s: jnp.ones(s, jnp.float32)

    cls_w = nrm(next(ks), (H, C))
    cls_w_pad = jnp.zeros((H, _CLS_PAD), jnp.float32).at[:, :C].set(cls_w)

    return {
        "tok_emb": nrm(next(ks), (V, H)),
        "pos_emb": nrm(next(ks), (P, H)),
        "type_emb": nrm(next(ks), (2, H)),
        "emb_ln_g": ones((1, H)), "emb_ln_b": zeros((1, H)),
        # Per-layer parameters stacked over the layer axis; Q/K/V fused along the output dim.
        "wqkv": nrm(next(ks), (L, H, 3 * H)), "bqkv": zeros((L, 1, 3 * H)),
        "wo": nrm(next(ks), (L, H, H)), "bo": zeros((L, 1, H)),
        "ln1_g": ones((L, 1, H)), "ln1_b": zeros((L, 1, H)),
        "w1": nrm(next(ks), (L, H, I)), "b1": zeros((L, 1, I)),
        "w2": nrm(next(ks), (L, I, H)), "b2": zeros((L, 1, H)),
        "ln2_g": ones((L, 1, H)), "ln2_b": zeros((L, 1, H)),
        "cls_w_pad": cls_w_pad, "cls_b_pad": zeros((1, _CLS_PAD)),
    }


# ---------------------------- forward ----------------------------

def classifier_forward(params, input_ids, attn_mask, cfg):
    B, S = input_ids.shape
    H, nh, hd = cfg["hidden"], cfg["heads"], cfg["head_dim"]
    L, I, C = cfg["layers"], cfg["intermediate"], cfg["no_labels"]
    CP = _CLS_PAD
    scale = 1.0 / math.sqrt(hd)

    # Embedding lookup is glue (gather has no clean rectangular-tile Pallas equivalent here);
    # everything downstream runs inside one fused Pallas kernel.
    emb = (jnp.take(params["tok_emb"], input_ids, axis=0)
           + params["pos_emb"][:S][None, :, :]
           + params["type_emb"][0][None, None, :]).astype(jnp.float32)          # (B, S, H)

    # HF-style additive attention mask, one row per example (no per-head duplication).
    add_mask = ((1.0 - attn_mask.astype(jnp.float32)) * -10000.0)[:, None, :]   # (B, 1, S)

    kernel = functools.partial(
        _fused_encoder_kernel,
        num_layers=L, num_heads=nh, head_dim=hd, hidden=H, eps=1e-12, scale=scale)

    def batch3(b):  # batch-indexed 3-D arrays
        return (b, 0, 0)

    def rep3(b):    # layer-stacked weights: constant block index -> DMA'd once, VMEM-resident
        return (0, 0, 0)

    def rep2(b):
        return (0, 0)

    in_specs = [
        pl.BlockSpec((1, S, H), batch3),                                    # embeddings
        pl.BlockSpec((1, 1, S), batch3),                                    # additive mask
        pl.BlockSpec((1, H), rep2), pl.BlockSpec((1, H), rep2),             # emb LN gamma/beta
        pl.BlockSpec((L, H, 3 * H), rep3), pl.BlockSpec((L, 1, 3 * H), rep3),  # fused QKV
        pl.BlockSpec((L, H, H), rep3), pl.BlockSpec((L, 1, H), rep3),       # attn out proj
        pl.BlockSpec((L, 1, H), rep3), pl.BlockSpec((L, 1, H), rep3),       # LN1
        pl.BlockSpec((L, H, I), rep3), pl.BlockSpec((L, 1, I), rep3),       # FFN in
        pl.BlockSpec((L, I, H), rep3), pl.BlockSpec((L, 1, H), rep3),       # FFN out
        pl.BlockSpec((L, 1, H), rep3), pl.BlockSpec((L, 1, H), rep3),       # LN2
        pl.BlockSpec((H, CP), rep2), pl.BlockSpec((1, CP), rep2),           # padded cls head
    ]
    out_specs = (
        pl.BlockSpec((1, 1, H), batch3),    # CLS feature
        pl.BlockSpec((1, 1, CP), batch3),   # padded logits (lane-dense, 128 wide)
    )
    out_shape = (
        jax.ShapeDtypeStruct((B, 1, H), jnp.float32),
        jax.ShapeDtypeStruct((B, 1, CP), jnp.float32),
    )

    cls_out, logits_pad = pl.pallas_call(
        kernel,
        grid=(B,),
        in_specs=in_specs,
        out_specs=out_specs,
        out_shape=out_shape,
        compiler_params=pltpu.CompilerParams(dimension_semantics=("parallel",)),
    )(emb, add_mask,
      params["emb_ln_g"], params["emb_ln_b"],
      params["wqkv"], params["bqkv"], params["wo"], params["bo"],
      params["ln1_g"], params["ln1_b"],
      params["w1"], params["b1"], params["w2"], params["b2"],
      params["ln2_g"], params["ln2_b"],
      params["cls_w_pad"], params["cls_b_pad"])

    cls_feat = cls_out[:, 0, :]        # (B, H)   == LM_feat
    logits = logits_pad[:, 0, :C]      # (B, no_labels) == output
    return {"output": logits, "LM_feat": cls_feat}


# ---------------------------- driver ----------------------------

if __name__ == "__main__":
    cfg = dict(hidden=32, heads=4, head_dim=8, layers=2, intermediate=64,
               vocab=64, max_pos=16, no_labels=5)

    key = jax.random.PRNGKey(0)
    pkey, dkey = jax.random.split(key)
    params = init_params(pkey, cfg)

    B, S = 2, 8
    input_ids = jax.random.randint(dkey, (B, S), 0, cfg["vocab"], dtype=jnp.int32)
    attn_mask = jnp.array([[1] * 8, [1] * 6 + [0] * 2], dtype=jnp.int32)

    fwd = jax.jit(functools.partial(classifier_forward, cfg=cfg))
    out = fwd(params, input_ids, attn_mask)
    jax.block_until_ready(out)

    assert out["output"].shape == (B, cfg["no_labels"])
    assert out["LM_feat"].shape == (B, cfg["hidden"])
    print("KERNEL_OK")
</pallas_src>

<mosaic_0001>
module attributes {stable_mosaic.version = 11 : i64} {
  func.func @_fused_encoder_kernel(%arg0: i32, %arg1: memref<1x8x32xf32, #tpu.memory_space<vmem>>, %arg2: memref<1x1x8xf32, #tpu.memory_space<vmem>>, %arg3: memref<1x32xf32, #tpu.memory_space<vmem>>, %arg4: memref<1x32xf32, #tpu.memory_space<vmem>>, %arg5: memref<2x32x96xf32, #tpu.memory_space<vmem>>, %arg6: memref<2x1x96xf32, #tpu.memory_space<vmem>>, %arg7: memref<2x32x32xf32, #tpu.memory_space<vmem>>, %arg8: memref<2x1x32xf32, #tpu.memory_space<vmem>>, %arg9: memref<2x1x32xf32, #tpu.memory_space<vmem>>, %arg10: memref<2x1x32xf32, #tpu.memory_space<vmem>>, %arg11: memref<2x32x64xf32, #tpu.memory_space<vmem>>, %arg12: memref<2x1x64xf32, #tpu.memory_space<vmem>>, %arg13: memref<2x64x32xf32, #tpu.memory_space<vmem>>, %arg14: memref<2x1x32xf32, #tpu.memory_space<vmem>>, %arg15: memref<2x1x32xf32, #tpu.memory_space<vmem>>, %arg16: memref<2x1x32xf32, #tpu.memory_space<vmem>>, %arg17: memref<32x128xf32, #tpu.memory_space<vmem>>, %arg18: memref<1x128xf32, #tpu.memory_space<vmem>>, %arg19: memref<1x1x32xf32, #tpu.memory_space<vmem>>, %arg20: memref<1x1x128xf32, #tpu.memory_space<vmem>>) attributes {dimension_semantics = [#tpu.dimension_semantics<parallel>], iteration_bounds = array<i64: 2>, scalar_prefetch = 0 : i64, scratch_operands = 0 : i64, tpu.core_type = #tpu.core_type<tc>, window_params = [{transform_indices = @transform_0, window_bounds = array<i64: 1, 8, 32>}, {transform_indices = @transform_1, window_bounds = array<i64: 1, 1, 8>}, {pipeline_mode = #tpu.pipeline_mode<synchronous>, transform_indices = @transform_2, window_bounds = array<i64: 1, 32>}, {pipeline_mode = #tpu.pipeline_mode<synchronous>, transform_indices = @transform_3, window_bounds = array<i64: 1, 32>}, {pipeline_mode = #tpu.pipeline_mode<synchronous>, transform_indices = @transform_4, window_bounds = array<i64: 2, 32, 96>}, {pipeline_mode = #tpu.pipeline_mode<synchronous>, transform_indices = @transform_5, window_bounds = array<i64: 2, 1, 96>}, {pipeline_mode = #tpu.pipeline_mode<synchronous>, transform_indices = @transform_6, window_bounds = array<i64: 2, 32, 32>}, {pipeline_mode = #tpu.pipeline_mode<synchronous>, transform_indices = @transform_7, window_bounds = array<i64: 2, 1, 32>}, {pipeline_mode = #tpu.pipeline_mode<synchronous>, transform_indices = @transform_8, window_bounds = array<i64: 2, 1, 32>}, {pipeline_mode = #tpu.pipeline_mode<synchronous>, transform_indices = @transform_9, window_bounds = array<i64: 2, 1, 32>}, {pipeline_mode = #tpu.pipeline_mode<synchronous>, transform_indices = @transform_10, window_bounds = array<i64: 2, 32, 64>}, {pipeline_mode = #tpu.pipeline_mode<synchronous>, transform_indices = @transform_11, window_bounds = array<i64: 2, 1, 64>}, {pipeline_mode = #tpu.pipeline_mode<synchronous>, transform_indices = @transform_12, window_bounds = array<i64: 2, 64, 32>}, {pipeline_mode = #tpu.pipeline_mode<synchronous>, transform_indices = @transform_13, window_bounds = array<i64: 2, 1, 32>}, {pipeline_mode = #tpu.pipeline_mode<synchronous>, transform_indices = @transform_14, window_bounds = array<i64: 2, 1, 32>}, {pipeline_mode = #tpu.pipeline_mode<synchronous>, transform_indices = @transform_15, window_bounds = array<i64: 2, 1, 32>}, {pipeline_mode = #tpu.pipeline_mode<synchronous>, transform_indices = @transform_16, window_bounds = array<i64: 32, 128>}, {pipeline_mode = #tpu.pipeline_mode<synchronous>, transform_indices = @transform_17, window_bounds = array<i64: 1, 128>}, {transform_indices = @transform_18, window_bounds = array<i64: 1, 1, 32>}, {transform_indices = @transform_19, window_bounds = array<i64: 1, 1, 128>}]} {
    %c0 = arith.constant 0 : index
    %c0_0 = arith.constant 0 : index
    %c0_1 = arith.constant 0 : index
    %0 = vector.load %arg1[%c0, %c0_0, %c0_1] : memref<1x8x32xf32, #tpu.memory_space<vmem>>, vector<1x8x32xf32>
    %1 = vector.shape_cast %0 : vector<1x8x32xf32> to vector<8x32xf32>
    %c0_2 = arith.constant 0 : index
    %c0_3 = arith.constant 0 : index
    %c0_4 = arith.constant 0 : index
    %2 = vector.load %arg2[%c0_2, %c0_3, %c0_4] : memref<1x1x8xf32, #tpu.memory_space<vmem>>, vector<1x1x8xf32>
    %3 = vector.shape_cast %2 : vector<1x1x8xf32> to vector<1x8xf32>
    %c0_5 = arith.constant 0 : index
    %c0_6 = arith.constant 0 : index
    %4 = vector.load %arg3[%c0_5, %c0_6] : memref<1x32xf32, #tpu.memory_space<vmem>>, vector<1x32xf32>
    %c0_7 = arith.constant 0 : index
    %c0_8 = arith.constant 0 : index
    %5 = vector.load %arg4[%c0_7, %c0_8] : memref<1x32xf32, #tpu.memory_space<vmem>>, vector<1x32xf32>
    %cst = arith.constant dense<0.000000e+00> : vector<8xf32>
    %6 = vector.multi_reduction <add>, %1, %cst [1] : vector<8x32xf32> to vector<8xf32>
    %7 = vector.shape_cast %6 : vector<8xf32> to vector<8x1xf32>
    %cst_9 = arith.constant 3.200000e+01 : f32
    %8 = vector.broadcast %cst_9 : f32 to vector<8x1xf32>
    %9 = arith.divf %7, %8 : vector<8x1xf32>
    %10 = vector.broadcast %9 : vector<8x1xf32> to vector<8x32xf32>
    %11 = arith.subf %1, %10 : vector<8x32xf32>
    %12 = arith.mulf %11, %11 : vector<8x32xf32>
    %cst_10 = arith.constant dense<0.000000e+00> : vector<8xf32>
    %13 = vector.multi_reduction <add>, %12, %cst_10 [1] : vector<8x32xf32> to vector<8xf32>
    %14 = vector.shape_cast %13 : vector<8xf32> to vector<8x1xf32>
    %cst_11 = arith.constant 3.200000e+01 : f32
    %15 = vector.broadcast %cst_11 : f32 to vector<8x1xf32>
    %16 = arith.divf %14, %15 : vector<8x1xf32>
    %cst_12 = arith.constant 9.99999996E-13 : f32
    %17 = vector.broadcast %cst_12 : f32 to vector<8x1xf32>
    %18 = arith.addf %16, %17 : vector<8x1xf32>
    %19 = math.rsqrt %18 : vector<8x1xf32>
    %20 = vector.broadcast %19 : vector<8x1xf32> to vector<8x32xf32>
    %21 = arith.mulf %11, %20 : vector<8x32xf32>
    %22 = vector.broadcast %4 : vector<1x32xf32> to vector<8x32xf32>
    %23 = arith.mulf %21, %22 : vector<8x32xf32>
    %24 = vector.broadcast %5 : vector<1x32xf32> to vector<8x32xf32>
    %25 = arith.addf %23, %24 : vector<8x32xf32>
    %c0_13 = arith.constant 0 : index
    %c0_14 = arith.constant 0 : index
    %c0_15 = arith.constant 0 : index
    %26 = vector.load %arg5[%c0_13, %c0_14, %c0_15] : memref<2x32x96xf32, #tpu.memory_space<vmem>>, vector<1x32x96xf32>
    %27 = vector.shape_cast %26 : vector<1x32x96xf32> to vector<32x96xf32>
    %cst_16 = arith.constant dense<0.000000e+00> : vector<8x96xf32>
    %28 = tpu.matmul %25, %27, %cst_16 {dimension_numbers = #tpu.dot_dimension_numbers<[1], [0], [0], [1], [0, 0, 1, 1], [], []>} : vector<8x32xf32>, vector<32x96xf32>, vector<8x96xf32> -> vector<8x96xf32>
    %c0_17 = arith.constant 0 : index
    %c0_18 = arith.constant 0 : index
    %c0_19 = arith.constant 0 : index
    %29 = vector.load %arg6[%c0_17, %c0_18, %c0_19] : memref<2x1x96xf32, #tpu.memory_space<vmem>>, vector<1x1x96xf32>
    %30 = vector.shape_cast %29 : vector<1x1x96xf32> to vector<1x96xf32>
    %31 = vector.broadcast %30 : vector<1x96xf32> to vector<8x96xf32>
    %32 = arith.addf %28, %31 : vector<8x96xf32>
    %33 = vector.extract_strided_slice %32 {offsets = [0, 0], sizes = [8, 32], strides = [1, 1]} : vector<8x96xf32> to vector<8x32xf32>
    %34 = vector.extract_strided_slice %32 {offsets = [0, 32], sizes = [8, 32], strides = [1, 1]} : vector<8x96xf32> to vector<8x32xf32>
    %35 = vector.extract_strided_slice %32 {offsets = [0, 64], sizes = [8, 32], strides = [1, 1]} : vector<8x96xf32> to vector<8x32xf32>
    %36 = vector.extract_strided_slice %33 {offsets = [0, 0], sizes = [8, 8], strides = [1, 1]} : vector<8x32xf32> to vector<8x8xf32>
    %37 = vector.extract_strided_slice %34 {offsets = [0, 0], sizes = [8, 8], strides = [1, 1]} : vector<8x32xf32> to vector<8x8xf32>
    %38 = vector.extract_strided_slice %35 {offsets = [0, 0], sizes = [8, 8], strides = [1, 1]} : vector<8x32xf32> to vector<8x8xf32>
    %39 = tpu.transpose %37, [1, 0] : vector<8x8xf32> -> vector<8x8xf32>
    %cst_20 = arith.constant dense<0.000000e+00> : vector<8x8xf32>
    %40 = tpu.matmul %36, %39, %cst_20 {dimension_numbers = #tpu.dot_dimension_numbers<[1], [0], [0], [1], [0, 0, 1, 1], [], []>} : vector<8x8xf32>, vector<8x8xf32>, vector<8x8xf32> -> vector<8x8xf32>
    %cst_21 = arith.constant 0.353553385 : f32
    %41 = vector.broadcast %cst_21 : f32 to vector<8x8xf32>
    %42 = arith.mulf %40, %41 : vector<8x8xf32>
    %43 = vector.broadcast %3 : vector<1x8xf32> to vector<8x8xf32>
    %44 = arith.addf %42, %43 : vector<8x8xf32>
    %cst_22 = arith.constant dense<0xFF800000> : vector<8xf32>
    %45 = vector.multi_reduction <maximumf>, %44, %cst_22 [1] : vector<8x8xf32> to vector<8xf32>
    %46 = vector.shape_cast %45 : vector<8xf32> to vector<8x1xf32>
    %47 = vector.broadcast %46 : vector<8x1xf32> to vector<8x8xf32>
    %48 = arith.subf %44, %47 : vector<8x8xf32>
    %49 = math.exp %48 : vector<8x8xf32>
    %cst_23 = arith.constant dense<0.000000e+00> : vector<8xf32>
    %50 = vector.multi_reduction <add>, %49, %cst_23 [1] : vector<8x8xf32> to vector<8xf32>
    %51 = vector.shape_cast %50 : vector<8xf32> to vector<8x1xf32>
    %52 = tpu.reciprocal %51 {approx = true} : vector<8x1xf32> -> vector<8x1xf32>
    %53 = vector.broadcast %52 : vector<8x1xf32> to vector<8x8xf32>
    %54 = arith.mulf %49, %53 : vector<8x8xf32>
    %cst_24 = arith.constant dense<0.000000e+00> : vector<8x8xf32>
    %55 = tpu.matmul %54, %38, %cst_24 {dimension_numbers = #tpu.dot_dimension_numbers<[1], [0], [0], [1], [0, 0, 1, 1], [], []>} : vector<8x8xf32>, vector<8x8xf32>, vector<8x8xf32> -> vector<8x8xf32>
    %56 = vector.extract_strided_slice %33 {offsets = [0, 8], sizes = [8, 8], strides = [1, 1]} : vector<8x32xf32> to vector<8x8xf32>
    %57 = vector.extract_strided_slice %34 {offsets = [0, 8], sizes = [8, 8], strides = [1, 1]} : vector<8x32xf32> to vector<8x8xf32>
    %58 = vector.extract_strided_slice %35 {offsets = [0, 8], sizes = [8, 8], strides = [1, 1]} : vector<8x32xf32> to vector<8x8xf32>
    %59 = tpu.transpose %57, [1, 0] : vector<8x8xf32> -> vector<8x8xf32>
    %cst_25 = arith.constant dense<0.000000e+00> : vector<8x8xf32>
    %60 = tpu.matmul %56, %59, %cst_25 {dimension_numbers = #tpu.dot_dimension_numbers<[1], [0], [0], [1], [0, 0, 1, 1], [], []>} : vector<8x8xf32>, vector<8x8xf32>, vector<8x8xf32> -> vector<8x8xf32>
    %cst_26 = arith.constant 0.353553385 : f32
    %61 = vector.broadcast %cst_26 : f32 to vector<8x8xf32>
    %62 = arith.mulf %60, %61 : vector<8x8xf32>
    %63 = vector.broadcast %3 : vector<1x8xf32> to vector<8x8xf32>
    %64 = arith.addf %62, %63 : vector<8x8xf32>
    %cst_27 = arith.constant dense<0xFF800000> : vector<8xf32>
    %65 = vector.multi_reduction <maximumf>, %64, %cst_27 [1] : vector<8x8xf32> to vector<8xf32>
    %66 = vector.shape_cast %65 : vector<8xf32> to vector<8x1xf32>
    %67 = vector.broadcast %66 : vector<8x1xf32> to vector<8x8xf32>
    %68 = arith.subf %64, %67 : vector<8x8xf32>
    %69 = math.exp %68 : vector<8x8xf32>
    %cst_28 = arith.constant dense<0.000000e+00> : vector<8xf32>
    %70 = vector.multi_reduction <add>, %69, %cst_28 [1] : vector<8x8xf32> to vector<8xf32>
    %71 = vector.shape_cast %70 : vector<8xf32> to vector<8x1xf32>
    %72 = tpu.reciprocal %71 {approx = true} : vector<8x1xf32> -> vector<8x1xf32>
    %73 = vector.broadcast %72 : vector<8x1xf32> to vector<8x8xf32>
    %74 = arith.mulf %69, %73 : vector<8x8xf32>
    %cst_29 = arith.constant dense<0.000000e+00> : vector<8x8xf32>
    %75 = tpu.matmul %74, %58, %cst_29 {dimension_numbers = #tpu.dot_dimension_numbers<[1], [0], [0], [1], [0, 0, 1, 1], [], []>} : vector<8x8xf32>, vector<8x8xf32>, vector<8x8xf32> -> vector<8x8xf32>
    %76 = vector.extract_strided_slice %33 {offsets = [0, 16], sizes = [8, 8], strides = [1, 1]} : vector<8x32xf32> to vector<8x8xf32>
    %77 = vector.extract_strided_slice %34 {offsets = [0, 16], sizes = [8, 8], strides = [1, 1]} : vector<8x32xf32> to vector<8x8xf32>
    %78 = vector.extract_strided_slice %35 {offsets = [0, 16], sizes = [8, 8], strides = [1, 1]} : vector<8x32xf32> to vector<8x8xf32>
    %79 = tpu.transpose %77, [1, 0] : vector<8x8xf32> -> vector<8x8xf32>
    %cst_30 = arith.constant dense<0.000000e+00> : vector<8x8xf32>
    %80 = tpu.matmul %76, %79, %cst_30 {dimension_numbers = #tpu.dot_dimension_numbers<[1], [0], [0], [1], [0, 0, 1, 1], [], []>} : vector<8x8xf32>, vector<8x8xf32>, vector<8x8xf32> -> vector<8x8xf32>
    %cst_31 = arith.constant 0.353553385 : f32
    %81 = vector.broadcast %cst_31 : f32 to vector<8x8xf32>
    %82 = arith.mulf %80, %81 : vector<8x8xf32>
    %83 = vector.broadcast %3 : vector<1x8xf32> to vector<8x8xf32>
    %84 = arith.addf %82, %83 : vector<8x8xf32>
    %cst_32 = arith.constant dense<0xFF800000> : vector<8xf32>
    %85 = vector.multi_reduction <maximumf>, %84, %cst_32 [1] : vector<8x8xf32> to vector<8xf32>
    %86 = vector.shape_cast %85 : vector<8xf32> to vector<8x1xf32>
    %87 = vector.broadcast %86 : vector<8x1xf32> to vector<8x8xf32>
    %88 = arith.subf %84, %87 : vector<8x8xf32>
    %89 = math.exp %88 : vector<8x8xf32>
    %cst_33 = arith.constant dense<0.000000e+00> : vector<8xf32>
    %90 = vector.multi_reduction <add>, %89, %cst_33 [1] : vector<8x8xf32> to vector<8xf32>
    %91 = vector.shape_cast %90 : vector<8xf32> to vector<8x1xf32>
    %92 = tpu.reciprocal %91 {approx = true} : vector<8x1xf32> -> vector<8x1xf32>
    %93 = vector.broadcast %92 : vector<8x1xf32> to vector<8x8xf32>
    %94 = arith.mulf %89, %93 : vector<8x8xf32>
    %cst_34 = arith.constant dense<0.000000e+00> : vector<8x8xf32>
    %95 = tpu.matmul %94, %78, %cst_34 {dimension_numbers = #tpu.dot_dimension_numbers<[1], [0], [0], [1], [0, 0, 1, 1], [], []>} : vector<8x8xf32>, vector<8x8xf32>, vector<8x8xf32> -> vector<8x8xf32>
    %96 = vector.extract_strided_slice %33 {offsets = [0, 24], sizes = [8, 8], strides = [1, 1]} : vector<8x32xf32> to vector<8x8xf32>
    %97 = vector.extract_strided_slice %34 {offsets = [0, 24], sizes = [8, 8], strides = [1, 1]} : vector<8x32xf32> to vector<8x8xf32>
    %98 = vector.extract_strided_slice %35 {offsets = [0, 24], sizes = [8, 8], strides = [1, 1]} : vector<8x32xf32> to vector<8x8xf32>
    %99 = tpu.transpose %97, [1, 0] : vector<8x8xf32> -> vector<8x8xf32>
    %cst_35 = arith.constant dense<0.000000e+00> : vector<8x8xf32>
    %100 = tpu.matmul %96, %99, %cst_35 {dimension_numbers = #tpu.dot_dimension_numbers<[1], [0], [0], [1], [0, 0, 1, 1], [], []>} : vector<8x8xf32>, vector<8x8xf32>, vector<8x8xf32> -> vector<8x8xf32>
    %cst_36 = arith.constant 0.353553385 : f32
    %101 = vector.broadcast %cst_36 : f32 to vector<8x8xf32>
    %102 = arith.mulf %100, %101 : vector<8x8xf32>
    %103 = vector.broadcast %3 : vector<1x8xf32> to vector<8x8xf32>
    %104 = arith.addf %102, %103 : vector<8x8xf32>
    %cst_37 = arith.constant dense<0xFF800000> : vector<8xf32>
    %105 = vector.multi_reduction <maximumf>, %104, %cst_37 [1] : vector<8x8xf32> to vector<8xf32>
    %106 = vector.shape_cast %105 : vector<8xf32> to vector<8x1xf32>
    %107 = vector.broadcast %106 : vector<8x1xf32> to vector<8x8xf32>
    %108 = arith.subf %104, %107 : vector<8x8xf32>
    %109 = math.exp %108 : vector<8x8xf32>
    %cst_38 = arith.constant dense<0.000000e+00> : vector<8xf32>
    %110 = vector.multi_reduction <add>, %109, %cst_38 [1] : vector<8x8xf32> to vector<8xf32>
    %111 = vector.shape_cast %110 : vector<8xf32> to vector<8x1xf32>
    %112 = tpu.reciprocal %111 {approx = true} : vector<8x1xf32> -> vector<8x1xf32>
    %113 = vector.broadcast %112 : vector<8x1xf32> to vector<8x8xf32>
    %114 = arith.mulf %109, %113 : vector<8x8xf32>
    %cst_39 = arith.constant dense<0.000000e+00> : vector<8x8xf32>
    %115 = tpu.matmul %114, %98, %cst_39 {dimension_numbers = #tpu.dot_dimension_numbers<[1], [0], [0], [1], [0, 0, 1, 1], [], []>} : vector<8x8xf32>, vector<8x8xf32>, vector<8x8xf32> -> vector<8x8xf32>
    %116 = tpu.concatenate %55, %75, %95, %115 in 1 : vector<8x8xf32>, vector<8x8xf32>, vector<8x8xf32>, vector<8x8xf32> -> vector<8x32xf32>
    %c0_40 = arith.constant 0 : index
    %c0_41 = arith.constant 0 : index
    %c0_42 = arith.constant 0 : index
    %117 = vector.load %arg7[%c0_40, %c0_41, %c0_42] : memref<2x32x32xf32, #tpu.memory_space<vmem>>, vector<1x32x32xf32>
    %118 = vector.shape_cast %117 : vector<1x32x32xf32> to vector<32x32xf32>
    %cst_43 = arith.constant dense<0.000000e+00> : vector<8x32xf32>
    %119 = tpu.matmul %116, %118, %cst_43 {dimension_numbers = #tpu.dot_dimension_numbers<[1], [0], [0], [1], [0, 0, 1, 1], [], []>} : vector<8x32xf32>, vector<32x32xf32>, vector<8x32xf32> -> vector<8x32xf32>
    %c0_44 = arith.constant 0 : index
    %c0_45 = arith.constant 0 : index
    %c0_46 = arith.constant 0 : index
    %120 = vector.load %arg8[%c0_44, %c0_45, %c0_46] : memref<2x1x32xf32, #tpu.memory_space<vmem>>, vector<1x1x32xf32>
    %121 = vector.shape_cast %120 : vector<1x1x32xf32> to vector<1x32xf32>
    %122 = vector.broadcast %121 : vector<1x32xf32> to vector<8x32xf32>
    %123 = arith.addf %119, %122 : vector<8x32xf32>
    %124 = arith.addf %123, %25 : vector<8x32xf32>
    %c0_47 = arith.constant 0 : index
    %c0_48 = arith.constant 0 : index
    %c0_49 = arith.constant 0 : index
    %125 = vector.load %arg9[%c0_47, %c0_48, %c0_49] : memref<2x1x32xf32, #tpu.memory_space<vmem>>, vector<1x1x32xf32>
    %126 = vector.shape_cast %125 : vector<1x1x32xf32> to vector<1x32xf32>
    %c0_50 = arith.constant 0 : index
    %c0_51 = arith.constant 0 : index
    %c0_52 = arith.constant 0 : index
    %127 = vector.load %arg10[%c0_50, %c0_51, %c0_52] : memref<2x1x32xf32, #tpu.memory_space<vmem>>, vector<1x1x32xf32>
    %128 = vector.shape_cast %127 : vector<1x1x32xf32> to vector<1x32xf32>
    %cst_53 = arith.constant dense<0.000000e+00> : vector<8xf32>
    %129 = vector.multi_reduction <add>, %124, %cst_53 [1] : vector<8x32xf32> to vector<8xf32>
    %130 = vector.shape_cast %129 : vector<8xf32> to vector<8x1xf32>
    %cst_54 = arith.constant 3.200000e+01 : f32
    %131 = vector.broadcast %cst_54 : f32 to vector<8x1xf32>
    %132 = arith.divf %130, %131 : vector<8x1xf32>
    %133 = vector.broadcast %132 : vector<8x1xf32> to vector<8x32xf32>
    %134 = arith.subf %124, %133 : vector<8x32xf32>
    %135 = arith.mulf %134, %134 : vector<8x32xf32>
    %cst_55 = arith.constant dense<0.000000e+00> : vector<8xf32>
    %136 = vector.multi_reduction <add>, %135, %cst_55 [1] : vector<8x32xf32> to vector<8xf32>
    %137 = vector.shape_cast %136 : vector<8xf32> to vector<8x1xf32>
    %cst_56 = arith.constant 3.200000e+01 : f32
    %138 = vector.broadcast %cst_56 : f32 to vector<8x1xf32>
    %139 = arith.divf %137, %138 : vector<8x1xf32>
    %cst_57 = arith.constant 9.99999996E-13 : f32
    %140 = vector.broadcast %cst_57 : f32 to vector<8x1xf32>
    %141 = arith.addf %139, %140 : vector<8x1xf32>
    %142 = math.rsqrt %141 : vector<8x1xf32>
    %143 = vector.broadcast %142 : vector<8x1xf32> to vector<8x32xf32>
    %144 = arith.mulf %134, %143 : vector<8x32xf32>
    %145 = vector.broadcast %126 : vector<1x32xf32> to vector<8x32xf32>
    %146 = arith.mulf %144, %145 : vector<8x32xf32>
    %147 = vector.broadcast %128 : vector<1x32xf32> to vector<8x32xf32>
    %148 = arith.addf %146, %147 : vector<8x32xf32>
    %c0_58 = arith.constant 0 : index
    %c0_59 = arith.constant 0 : index
    %c0_60 = arith.constant 0 : index
    %149 = vector.load %arg11[%c0_58, %c0_59, %c0_60] : memref<2x32x64xf32, #tpu.memory_space<vmem>>, vector<1x32x64xf32>
    %150 = vector.shape_cast %149 : vector<1x32x64xf32> to vector<32x64xf32>
    %cst_61 = arith.constant dense<0.000000e+00> : vector<8x64xf32>
    %151 = tpu.matmul %148, %150, %cst_61 {dimension_numbers = #tpu.dot_dimension_numbers<[1], [0], [0], [1], [0, 0, 1, 1], [], []>} : vector<8x32xf32>, vector<32x64xf32>, vector<8x64xf32> -> vector<8x64xf32>
    %c0_62 = arith.constant 0 : index
    %c0_63 = arith.constant 0 : index
    %c0_64 = arith.constant 0 : index
    %152 = vector.load %arg12[%c0_62, %c0_63, %c0_64] : memref<2x1x64xf32, #tpu.memory_space<vmem>>, vector<1x1x64xf32>
    %153 = vector.shape_cast %152 : vector<1x1x64xf32> to vector<1x64xf32>
    %154 = vector.broadcast %153 : vector<1x64xf32> to vector<8x64xf32>
    %155 = arith.addf %151, %154 : vector<8x64xf32>
    %cst_65 = arith.constant 5.000000e-01 : f32
    %156 = vector.broadcast %cst_65 : f32 to vector<8x64xf32>
    %157 = arith.mulf %156, %155 : vector<8x64xf32>
    %cst_66 = arith.constant 4.471500e-02 : f32
    %158 = vector.broadcast %cst_66 : f32 to vector<8x64xf32>
    %159 = arith.mulf %158, %155 : vector<8x64xf32>
    %160 = arith.mulf %159, %155 : vector<8x64xf32>
    %161 = arith.mulf %160, %155 : vector<8x64xf32>
    %162 = arith.addf %155, %161 : vector<8x64xf32>
    %cst_67 = arith.constant 0.797884583 : f32
    %163 = vector.broadcast %cst_67 : f32 to vector<8x64xf32>
    %164 = arith.mulf %163, %162 : vector<8x64xf32>
    %165 = math.tanh %164 : vector<8x64xf32>
    %cst_68 = arith.constant 1.000000e+00 : f32
    %166 = vector.broadcast %cst_68 : f32 to vector<8x64xf32>
    %167 = arith.addf %166, %165 : vector<8x64xf32>
    %168 = arith.mulf %157, %167 : vector<8x64xf32>
    %c0_69 = arith.constant 0 : index
    %c0_70 = arith.constant 0 : index
    %c0_71 = arith.constant 0 : index
    %169 = vector.load %arg13[%c0_69, %c0_70, %c0_71] : memref<2x64x32xf32, #tpu.memory_space<vmem>>, vector<1x64x32xf32>
    %170 = vector.shape_cast %169 : vector<1x64x32xf32> to vector<64x32xf32>
    %cst_72 = arith.constant dense<0.000000e+00> : vector<8x32xf32>
    %171 = tpu.matmul %168, %170, %cst_72 {dimension_numbers = #tpu.dot_dimension_numbers<[1], [0], [0], [1], [0, 0, 1, 1], [], []>} : vector<8x64xf32>, vector<64x32xf32>, vector<8x32xf32> -> vector<8x32xf32>
    %c0_73 = arith.constant 0 : index
    %c0_74 = arith.constant 0 : index
    %c0_75 = arith.constant 0 : index
    %172 = vector.load %arg14[%c0_73, %c0_74, %c0_75] : memref<2x1x32xf32, #tpu.memory_space<vmem>>, vector<1x1x32xf32>
    %173 = vector.shape_cast %172 : vector<1x1x32xf32> to vector<1x32xf32>
    %174 = vector.broadcast %173 : vector<1x32xf32> to vector<8x32xf32>
    %175 = arith.addf %171, %174 : vector<8x32xf32>
    %176 = arith.addf %175, %148 : vector<8x32xf32>
    %c0_76 = arith.constant 0 : index
    %c0_77 = arith.constant 0 : index
    %c0_78 = arith.constant 0 : index
    %177 = vector.load %arg15[%c0_76, %c0_77, %c0_78] : memref<2x1x32xf32, #tpu.memory_space<vmem>>, vector<1x1x32xf32>
    %178 = vector.shape_cast %177 : vector<1x1x32xf32> to vector<1x32xf32>
    %c0_79 = arith.constant 0 : index
    %c0_80 = arith.constant 0 : index
    %c0_81 = arith.constant 0 : index
    %179 = vector.load %arg16[%c0_79, %c0_80, %c0_81] : memref<2x1x32xf32, #tpu.memory_space<vmem>>, vector<1x1x32xf32>
    %180 = vector.shape_cast %179 : vector<1x1x32xf32> to vector<1x32xf32>
    %cst_82 = arith.constant dense<0.000000e+00> : vector<8xf32>
    %181 = vector.multi_reduction <add>, %176, %cst_82 [1] : vector<8x32xf32> to vector<8xf32>
    %182 = vector.shape_cast %181 : vector<8xf32> to vector<8x1xf32>
    %cst_83 = arith.constant 3.200000e+01 : f32
    %183 = vector.broadcast %cst_83 : f32 to vector<8x1xf32>
    %184 = arith.divf %182, %183 : vector<8x1xf32>
    %185 = vector.broadcast %184 : vector<8x1xf32> to vector<8x32xf32>
    %186 = arith.subf %176, %185 : vector<8x32xf32>
    %187 = arith.mulf %186, %186 : vector<8x32xf32>
    %cst_84 = arith.constant dense<0.000000e+00> : vector<8xf32>
    %188 = vector.multi_reduction <add>, %187, %cst_84 [1] : vector<8x32xf32> to vector<8xf32>
    %189 = vector.shape_cast %188 : vector<8xf32> to vector<8x1xf32>
    %cst_85 = arith.constant 3.200000e+01 : f32
    %190 = vector.broadcast %cst_85 : f32 to vector<8x1xf32>
    %191 = arith.divf %189, %190 : vector<8x1xf32>
    %cst_86 = arith.constant 9.99999996E-13 : f32
    %192 = vector.broadcast %cst_86 : f32 to vector<8x1xf32>
    %193 = arith.addf %191, %192 : vector<8x1xf32>
    %194 = math.rsqrt %193 : vector<8x1xf32>
    %195 = vector.broadcast %194 : vector<8x1xf32> to vector<8x32xf32>
    %196 = arith.mulf %186, %195 : vector<8x32xf32>
    %197 = vector.broadcast %178 : vector<1x32xf32> to vector<8x32xf32>
    %198 = arith.mulf %196, %197 : vector<8x32xf32>
    %199 = vector.broadcast %180 : vector<1x32xf32> to vector<8x32xf32>
    %200 = arith.addf %198, %199 : vector<8x32xf32>
    %c1 = arith.constant 1 : index
    %c0_87 = arith.constant 0 : index
    %c0_88 = arith.constant 0 : index
    %201 = vector.load %arg5[%c1, %c0_87, %c0_88] : memref<2x32x96xf32, #tpu.memory_space<vmem>>, vector<1x32x96xf32>
    %202 = vector.shape_cast %201 : vector<1x32x96xf32> to vector<32x96xf32>
    %cst_89 = arith.constant dense<0.000000e+00> : vector<8x96xf32>
    %203 = tpu.matmul %200, %202, %cst_89 {dimension_numbers = #tpu.dot_dimension_numbers<[1], [0], [0], [1], [0, 0, 1, 1], [], []>} : vector<8x32xf32>, vector<32x96xf32>, vector<8x96xf32> -> vector<8x96xf32>
    %c1_90 = arith.constant 1 : index
    %c0_91 = arith.constant 0 : index
    %c0_92 = arith.constant 0 : index
    %204 = vector.load %arg6[%c1_90, %c0_91, %c0_92] : memref<2x1x96xf32, #tpu.memory_space<vmem>>, vector<1x1x96xf32>
    %205 = vector.shape_cast %204 : vector<1x1x96xf32> to vector<1x96xf32>
    %206 = vector.broadcast %205 : vector<1x96xf32> to vector<8x96xf32>
    %207 = arith.addf %203, %206 : vector<8x96xf32>
    %208 = vector.extract_strided_slice %207 {offsets = [0, 0], sizes = [8, 32], strides = [1, 1]} : vector<8x96xf32> to vector<8x32xf32>
    %209 = vector.extract_strided_slice %207 {offsets = [0, 32], sizes = [8, 32], strides = [1, 1]} : vector<8x96xf32> to vector<8x32xf32>
    %210 = vector.extract_strided_slice %207 {offsets = [0, 64], sizes = [8, 32], strides = [1, 1]} : vector<8x96xf32> to vector<8x32xf32>
    %211 = vector.extract_strided_slice %208 {offsets = [0, 0], sizes = [8, 8], strides = [1, 1]} : vector<8x32xf32> to vector<8x8xf32>
    %212 = vector.extract_strided_slice %209 {offsets = [0, 0], sizes = [8, 8], strides = [1, 1]} : vector<8x32xf32> to vector<8x8xf32>
    %213 = vector.extract_strided_slice %210 {offsets = [0, 0], sizes = [8, 8], strides = [1, 1]} : vector<8x32xf32> to vector<8x8xf32>
    %214 = tpu.transpose %212, [1, 0] : vector<8x8xf32> -> vector<8x8xf32>
    %cst_93 = arith.constant dense<0.000000e+00> : vector<8x8xf32>
    %215 = tpu.matmul %211, %214, %cst_93 {dimension_numbers = #tpu.dot_dimension_numbers<[1], [0], [0], [1], [0, 0, 1, 1], [], []>} : vector<8x8xf32>, vector<8x8xf32>, vector<8x8xf32> -> vector<8x8xf32>
    %cst_94 = arith.constant 0.353553385 : f32
    %216 = vector.broadcast %cst_94 : f32 to vector<8x8xf32>
    %217 = arith.mulf %215, %216 : vector<8x8xf32>
    %218 = vector.broadcast %3 : vector<1x8xf32> to vector<8x8xf32>
    %219 = arith.addf %217, %218 : vector<8x8xf32>
    %cst_95 = arith.constant dense<0xFF800000> : vector<8xf32>
    %220 = vector.multi_reduction <maximumf>, %219, %cst_95 [1] : vector<8x8xf32> to vector<8xf32>
    %221 = vector.shape_cast %220 : vector<8xf32> to vector<8x1xf32>
    %222 = vector.broadcast %221 : vector<8x1xf32> to vector<8x8xf32>
    %223 = arith.subf %219, %222 : vector<8x8xf32>
    %224 = math.exp %223 : vector<8x8xf32>
    %cst_96 = arith.constant dense<0.000000e+00> : vector<8xf32>
    %225 = vector.multi_reduction <add>, %224, %cst_96 [1] : vector<8x8xf32> to vector<8xf32>
    %226 = vector.shape_cast %225 : vector<8xf32> to vector<8x1xf32>
    %227 = tpu.reciprocal %226 {approx = true} : vector<8x1xf32> -> vector<8x1xf32>
    %228 = vector.broadcast %227 : vector<8x1xf32> to vector<8x8xf32>
    %229 = arith.mulf %224, %228 : vector<8x8xf32>
    %cst_97 = arith.constant dense<0.000000e+00> : vector<8x8xf32>
    %230 = tpu.matmul %229, %213, %cst_97 {dimension_numbers = #tpu.dot_dimension_numbers<[1], [0], [0], [1], [0, 0, 1, 1], [], []>} : vector<8x8xf32>, vector<8x8xf32>, vector<8x8xf32> -> vector<8x8xf32>
    %231 = vector.extract_strided_slice %208 {offsets = [0, 8], sizes = [8, 8], strides = [1, 1]} : vector<8x32xf32> to vector<8x8xf32>
    %232 = vector.extract_strided_slice %209 {offsets = [0, 8], sizes = [8, 8], strides = [1, 1]} : vector<8x32xf32> to vector<8x8xf32>
    %233 = vector.extract_strided_slice %210 {offsets = [0, 8], sizes = [8, 8], strides = [1, 1]} : vector<8x32xf32> to vector<8x8xf32>
    %234 = tpu.transpose %232, [1, 0] : vector<8x8xf32> -> vector<8x8xf32>
    %cst_98 = arith.constant dense<0.000000e+00> : vector<8x8xf32>
    %235 = tpu.matmul %231, %234, %cst_98 {dimension_numbers = #tpu.dot_dimension_numbers<[1], [0], [0], [1], [0, 0, 1, 1], [], []>} : vector<8x8xf32>, vector<8x8xf32>, vector<8x8xf32> -> vector<8x8xf32>
    %cst_99 = arith.constant 0.353553385 : f32
    %236 = vector.broadcast %cst_99 : f32 to vector<8x8xf32>
    %237 = arith.mulf %235, %236 : vector<8x8xf32>
    %238 = vector.broadcast %3 : vector<1x8xf32> to vector<8x8xf32>
    %239 = arith.addf %237, %238 : vector<8x8xf32>
    %cst_100 = arith.constant dense<0xFF800000> : vector<8xf32>
    %240 = vector.multi_reduction <maximumf>, %239, %cst_100 [1] : vector<8x8xf32> to vector<8xf32>
    %241 = vector.shape_cast %240 : vector<8xf32> to vector<8x1xf32>
    %242 = vector.broadcast %241 : vector<8x1xf32> to vector<8x8xf32>
    %243 = arith.subf %239, %242 : vector<8x8xf32>
    %244 = math.exp %243 : vector<8x8xf32>
    %cst_101 = arith.constant dense<0.000000e+00> : vector<8xf32>
    %245 = vector.multi_reduction <add>, %244, %cst_101 [1] : vector<8x8xf32> to vector<8xf32>
    %246 = vector.shape_cast %245 : vector<8xf32> to vector<8x1xf32>
    %247 = tpu.reciprocal %246 {approx = true} : vector<8x1xf32> -> vector<8x1xf32>
    %248 = vector.broadcast %247 : vector<8x1xf32> to vector<8x8xf32>
    %249 = arith.mulf %244, %248 : vector<8x8xf32>
    %cst_102 = arith.constant dense<0.000000e+00> : vector<8x8xf32>
    %250 = tpu.matmul %249, %233, %cst_102 {dimension_numbers = #tpu.dot_dimension_numbers<[1], [0], [0], [1], [0, 0, 1, 1], [], []>} : vector<8x8xf32>, vector<8x8xf32>, vector<8x8xf32> -> vector<8x8xf32>
    %251 = vector.extract_strided_slice %208 {offsets = [0, 16], sizes = [8, 8], strides = [1, 1]} : vector<8x32xf32> to vector<8x8xf32>
    %252 = vector.extract_strided_slice %209 {offsets = [0, 16], sizes = [8, 8], strides = [1, 1]} : vector<8x32xf32> to vector<8x8xf32>
    %253 = vector.extract_strided_slice %210 {offsets = [0, 16], sizes = [8, 8], strides = [1, 1]} : vector<8x32xf32> to vector<8x8xf32>
    %254 = tpu.transpose %252, [1, 0] : vector<8x8xf32> -> vector<8x8xf32>
    %cst_103 = arith.constant dense<0.000000e+00> : vector<8x8xf32>
    %255 = tpu.matmul %251, %254, %cst_103 {dimension_numbers = #tpu.dot_dimension_numbers<[1], [0], [0], [1], [0, 0, 1, 1], [], []>} : vector<8x8xf32>, vector<8x8xf32>, vector<8x8xf32> -> vector<8x8xf32>
    %cst_104 = arith.constant 0.353553385 : f32
    %256 = vector.broadcast %cst_104 : f32 to vector<8x8xf32>
    %257 = arith.mulf %255, %256 : vector<8x8xf32>
    %258 = vector.broadcast %3 : vector<1x8xf32> to vector<8x8xf32>
    %259 = arith.addf %257, %258 : vector<8x8xf32>
    %cst_105 = arith.constant dense<0xFF800000> : vector<8xf32>
    %260 = vector.multi_reduction <maximumf>, %259, %cst_105 [1] : vector<8x8xf32> to vector<8xf32>
    %261 = vector.shape_cast %260 : vector<8xf32> to vector<8x1xf32>
    %262 = vector.broadcast %261 : vector<8x1xf32> to vector<8x8xf32>
    %263 = arith.subf %259, %262 : vector<8x8xf32>
    %264 = math.exp %263 : vector<8x8xf32>
    %cst_106 = arith.constant dense<0.000000e+00> : vector<8xf32>
    %265 = vector.multi_reduction <add>, %264, %cst_106 [1] : vector<8x8xf32> to vector<8xf32>
    %266 = vector.shape_cast %265 : vector<8xf32> to vector<8x1xf32>
    %267 = tpu.reciprocal %266 {approx = true} : vector<8x1xf32> -> vector<8x1xf32>
    %268 = vector.broadcast %267 : vector<8x1xf32> to vector<8x8xf32>
    %269 = arith.mulf %264, %268 : vector<8x8xf32>
    %cst_107 = arith.constant dense<0.000000e+00> : vector<8x8xf32>
    %270 = tpu.matmul %269, %253, %cst_107 {dimension_numbers = #tpu.dot_dimension_numbers<[1], [0], [0], [1], [0, 0, 1, 1], [], []>} : vector<8x8xf32>, vector<8x8xf32>, vector<8x8xf32> -> vector<8x8xf32>
    %271 = vector.extract_strided_slice %208 {offsets = [0, 24], sizes = [8, 8], strides = [1, 1]} : vector<8x32xf32> to vector<8x8xf32>
    %272 = vector.extract_strided_slice %209 {offsets = [0, 24], sizes = [8, 8], strides = [1, 1]} : vector<8x32xf32> to vector<8x8xf32>
    %273 = vector.extract_strided_slice %210 {offsets = [0, 24], sizes = [8, 8], strides = [1, 1]} : vector<8x32xf32> to vector<8x8xf32>
    %274 = tpu.transpose %272, [1, 0] : vector<8x8xf32> -> vector<8x8xf32>
    %cst_108 = arith.constant dense<0.000000e+00> : vector<8x8xf32>
    %275 = tpu.matmul %271, %274, %cst_108 {dimension_numbers = #tpu.dot_dimension_numbers<[1], [0], [0], [1], [0, 0, 1, 1], [], []>} : vector<8x8xf32>, vector<8x8xf32>, vector<8x8xf32> -> vector<8x8xf32>
    %cst_109 = arith.constant 0.353553385 : f32
    %276 = vector.broadcast %cst_109 : f32 to vector<8x8xf32>
    %277 = arith.mulf %275, %276 : vector<8x8xf32>
    %278 = vector.broadcast %3 : vector<1x8xf32> to vector<8x8xf32>
    %279 = arith.addf %277, %278 : vector<8x8xf32>
    %cst_110 = arith.constant dense<0xFF800000> : vector<8xf32>
    %280 = vector.multi_reduction <maximumf>, %279, %cst_110 [1] : vector<8x8xf32> to vector<8xf32>
    %281 = vector.shape_cast %280 : vector<8xf32> to vector<8x1xf32>
    %282 = vector.broadcast %281 : vector<8x1xf32> to vector<8x8xf32>
    %283 = arith.subf %279, %282 : vector<8x8xf32>
    %284 = math.exp %283 : vector<8x8xf32>
    %cst_111 = arith.constant dense<0.000000e+00> : vector<8xf32>
    %285 = vector.multi_reduction <add>, %284, %cst_111 [1] : vector<8x8xf32> to vector<8xf32>
    %286 = vector.shape_cast %285 : vector<8xf32> to vector<8x1xf32>
    %287 = tpu.reciprocal %286 {approx = true} : vector<8x1xf32> -> vector<8x1xf32>
    %288 = vector.broadcast %287 : vector<8x1xf32> to vector<8x8xf32>
    %289 = arith.mulf %284, %288 : vector<8x8xf32>
    %cst_112 = arith.constant dense<0.000000e+00> : vector<8x8xf32>
    %290 = tpu.matmul %289, %273, %cst_112 {dimension_numbers = #tpu.dot_dimension_numbers<[1], [0], [0], [1], [0, 0, 1, 1], [], []>} : vector<8x8xf32>, vector<8x8xf32>, vector<8x8xf32> -> vector<8x8xf32>
    %291 = tpu.concatenate %230, %250, %270, %290 in 1 : vector<8x8xf32>, vector<8x8xf32>, vector<8x8xf32>, vector<8x8xf32> -> vector<8x32xf32>
    %c1_113 = arith.constant 1 : index
    %c0_114 = arith.constant 0 : index
    %c0_115 = arith.constant 0 : index
    %292 = vector.load %arg7[%c1_113, %c0_114, %c0_115] : memref<2x32x32xf32, #tpu.memory_space<vmem>>, vector<1x32x32xf32>
    %293 = vector.shape_cast %292 : vector<1x32x32xf32> to vector<32x32xf32>
    %cst_116 = arith.constant dense<0.000000e+00> : vector<8x32xf32>
    %294 = tpu.matmul %291, %293, %cst_116 {dimension_numbers = #tpu.dot_dimension_numbers<[1], [0], [0], [1], [0, 0, 1, 1], [], []>} : vector<8x32xf32>, vector<32x32xf32>, vector<8x32xf32> -> vector<8x32xf32>
    %c1_117 = arith.constant 1 : index
    %c0_118 = arith.constant 0 : index
    %c0_119 = arith.constant 0 : index
    %295 = vector.load %arg8[%c1_117, %c0_118, %c0_119] : memref<2x1x32xf32, #tpu.memory_space<vmem>>, vector<1x1x32xf32>
    %296 = vector.shape_cast %295 : vector<1x1x32xf32> to vector<1x32xf32>
    %297 = vector.broadcast %296 : vector<1x32xf32> to vector<8x32xf32>
    %298 = arith.addf %294, %297 : vector<8x32xf32>
    %299 = arith.addf %298, %200 : vector<8x32xf32>
    %c1_120 = arith.constant 1 : index
    %c0_121 = arith.constant 0 : index
    %c0_122 = arith.constant 0 : index
    %300 = vector.load %arg9[%c1_120, %c0_121, %c0_122] : memref<2x1x32xf32, #tpu.memory_space<vmem>>, vector<1x1x32xf32>
    %301 = vector.shape_cast %300 : vector<1x1x32xf32> to vector<1x32xf32>
    %c1_123 = arith.constant 1 : index
    %c0_124 = arith.constant 0 : index
    %c0_125 = arith.constant 0 : index
    %302 = vector.load %arg10[%c1_123, %c0_124, %c0_125] : memref<2x1x32xf32, #tpu.memory_space<vmem>>, vector<1x1x32xf32>
    %303 = vector.shape_cast %302 : vector<1x1x32xf32> to vector<1x32xf32>
    %cst_126 = arith.constant dense<0.000000e+00> : vector<8xf32>
    %304 = vector.multi_reduction <add>, %299, %cst_126 [1] : vector<8x32xf32> to vector<8xf32>
    %305 = vector.shape_cast %304 : vector<8xf32> to vector<8x1xf32>
    %cst_127 = arith.constant 3.200000e+01 : f32
    %306 = vector.broadcast %cst_127 : f32 to vector<8x1xf32>
    %307 = arith.divf %305, %306 : vector<8x1xf32>
    %308 = vector.broadcast %307 : vector<8x1xf32> to vector<8x32xf32>
    %309 = arith.subf %299, %308 : vector<8x32xf32>
    %310 = arith.mulf %309, %309 : vector<8x32xf32>
    %cst_128 = arith.constant dense<0.000000e+00> : vector<8xf32>
    %311 = vector.multi_reduction <add>, %310, %cst_128 [1] : vector<8x32xf32> to vector<8xf32>
    %312 = vector.shape_cast %311 : vector<8xf32> to vector<8x1xf32>
    %cst_129 = arith.constant 3.200000e+01 : f32
    %313 = vector.broadcast %cst_129 : f32 to vector<8x1xf32>
    %314 = arith.divf %312, %313 : vector<8x1xf32>
    %cst_130 = arith.constant 9.99999996E-13 : f32
    %315 = vector.broadcast %cst_130 : f32 to vector<8x1xf32>
    %316 = arith.addf %314, %315 : vector<8x1xf32>
    %317 = math.rsqrt %316 : vector<8x1xf32>
    %318 = vector.broadcast %317 : vector<8x1xf32> to vector<8x32xf32>
    %319 = arith.mulf %309, %318 : vector<8x32xf32>
    %320 = vector.broadcast %301 : vector<1x32xf32> to vector<8x32xf32>
    %321 = arith.mulf %319, %320 : vector<8x32xf32>
    %322 = vector.broadcast %303 : vector<1x32xf32> to vector<8x32xf32>
    %323 = arith.addf %321, %322 : vector<8x32xf32>
    %c1_131 = arith.constant 1 : index
    %c0_132 = arith.constant 0 : index
    %c0_133 = arith.constant 0 : index
    %324 = vector.load %arg11[%c1_131, %c0_132, %c0_133] : memref<2x32x64xf32, #tpu.memory_space<vmem>>, vector<1x32x64xf32>
    %325 = vector.shape_cast %324 : vector<1x32x64xf32> to vector<32x64xf32>
    %cst_134 = arith.constant dense<0.000000e+00> : vector<8x64xf32>
    %326 = tpu.matmul %323, %325, %cst_134 {dimension_numbers = #tpu.dot_dimension_numbers<[1], [0], [0], [1], [0, 0, 1, 1], [], []>} : vector<8x32xf32>, vector<32x64xf32>, vector<8x64xf32> -> vector<8x64xf32>
    %c1_135 = arith.constant 1 : index
    %c0_136 = arith.constant 0 : index
    %c0_137 = arith.constant 0 : index
    %327 = vector.load %arg12[%c1_135, %c0_136, %c0_137] : memref<2x1x64xf32, #tpu.memory_space<vmem>>, vector<1x1x64xf32>
    %328 = vector.shape_cast %327 : vector<1x1x64xf32> to vector<1x64xf32>
    %329 = vector.broadcast %328 : vector<1x64xf32> to vector<8x64xf32>
    %330 = arith.addf %326, %329 : vector<8x64xf32>
    %cst_138 = arith.constant 5.000000e-01 : f32
    %331 = vector.broadcast %cst_138 : f32 to vector<8x64xf32>
    %332 = arith.mulf %331, %330 : vector<8x64xf32>
    %cst_139 = arith.constant 4.471500e-02 : f32
    %333 = vector.broadcast %cst_139 : f32 to vector<8x64xf32>
    %334 = arith.mulf %333, %330 : vector<8x64xf32>
    %335 = arith.mulf %334, %330 : vector<8x64xf32>
    %336 = arith.mulf %335, %330 : vector<8x64xf32>
    %337 = arith.addf %330, %336 : vector<8x64xf32>
    %cst_140 = arith.constant 0.797884583 : f32
    %338 = vector.broadcast %cst_140 : f32 to vector<8x64xf32>
    %339 = arith.mulf %338, %337 : vector<8x64xf32>
    %340 = math.tanh %339 : vector<8x64xf32>
    %cst_141 = arith.constant 1.000000e+00 : f32
    %341 = vector.broadcast %cst_141 : f32 to vector<8x64xf32>
    %342 = arith.addf %341, %340 : vector<8x64xf32>
    %343 = arith.mulf %332, %342 : vector<8x64xf32>
    %c1_142 = arith.constant 1 : index
    %c0_143 = arith.constant 0 : index
    %c0_144 = arith.constant 0 : index
    %344 = vector.load %arg13[%c1_142, %c0_143, %c0_144] : memref<2x64x32xf32, #tpu.memory_space<vmem>>, vector<1x64x32xf32>
    %345 = vector.shape_cast %344 : vector<1x64x32xf32> to vector<64x32xf32>
    %cst_145 = arith.constant dense<0.000000e+00> : vector<8x32xf32>
    %346 = tpu.matmul %343, %345, %cst_145 {dimension_numbers = #tpu.dot_dimension_numbers<[1], [0], [0], [1], [0, 0, 1, 1], [], []>} : vector<8x64xf32>, vector<64x32xf32>, vector<8x32xf32> -> vector<8x32xf32>
    %c1_146 = arith.constant 1 : index
    %c0_147 = arith.constant 0 : index
    %c0_148 = arith.constant 0 : index
    %347 = vector.load %arg14[%c1_146, %c0_147, %c0_148] : memref<2x1x32xf32, #tpu.memory_space<vmem>>, vector<1x1x32xf32>
    %348 = vector.shape_cast %347 : vector<1x1x32xf32> to vector<1x32xf32>
    %349 = vector.broadcast %348 : vector<1x32xf32> to vector<8x32xf32>
    %350 = arith.addf %346, %349 : vector<8x32xf32>
    %351 = arith.addf %350, %323 : vector<8x32xf32>
    %c1_149 = arith.constant 1 : index
    %c0_150 = arith.constant 0 : index
    %c0_151 = arith.constant 0 : index
    %352 = vector.load %arg15[%c1_149, %c0_150, %c0_151] : memref<2x1x32xf32, #tpu.memory_space<vmem>>, vector<1x1x32xf32>
    %353 = vector.shape_cast %352 : vector<1x1x32xf32> to vector<1x32xf32>
    %c1_152 = arith.constant 1 : index
    %c0_153 = arith.constant 0 : index
    %c0_154 = arith.constant 0 : index
    %354 = vector.load %arg16[%c1_152, %c0_153, %c0_154] : memref<2x1x32xf32, #tpu.memory_space<vmem>>, vector<1x1x32xf32>
    %355 = vector.shape_cast %354 : vector<1x1x32xf32> to vector<1x32xf32>
    %cst_155 = arith.constant dense<0.000000e+00> : vector<8xf32>
    %356 = vector.multi_reduction <add>, %351, %cst_155 [1] : vector<8x32xf32> to vector<8xf32>
    %357 = vector.shape_cast %356 : vector<8xf32> to vector<8x1xf32>
    %cst_156 = arith.constant 3.200000e+01 : f32
    %358 = vector.broadcast %cst_156 : f32 to vector<8x1xf32>
    %359 = arith.divf %357, %358 : vector<8x1xf32>
    %360 = vector.broadcast %359 : vector<8x1xf32> to vector<8x32xf32>
    %361 = arith.subf %351, %360 : vector<8x32xf32>
    %362 = arith.mulf %361, %361 : vector<8x32xf32>
    %cst_157 = arith.constant dense<0.000000e+00> : vector<8xf32>
    %363 = vector.multi_reduction <add>, %362, %cst_157 [1] : vector<8x32xf32> to vector<8xf32>
    %364 = vector.shape_cast %363 : vector<8xf32> to vector<8x1xf32>
    %cst_158 = arith.constant 3.200000e+01 : f32
    %365 = vector.broadcast %cst_158 : f32 to vector<8x1xf32>
    %366 = arith.divf %364, %365 : vector<8x1xf32>
    %cst_159 = arith.constant 9.99999996E-13 : f32
    %367 = vector.broadcast %cst_159 : f32 to vector<8x1xf32>
    %368 = arith.addf %366, %367 : vector<8x1xf32>
    %369 = math.rsqrt %368 : vector<8x1xf32>
    %370 = vector.broadcast %369 : vector<8x1xf32> to vector<8x32xf32>
    %371 = arith.mulf %361, %370 : vector<8x32xf32>
    %372 = vector.broadcast %353 : vector<1x32xf32> to vector<8x32xf32>
    %373 = arith.mulf %371, %372 : vector<8x32xf32>
    %374 = vector.broadcast %355 : vector<1x32xf32> to vector<8x32xf32>
    %375 = arith.addf %373, %374 : vector<8x32xf32>
    %376 = vector.extract_strided_slice %375 {offsets = [0, 0], sizes = [1, 32], strides = [1, 1]} : vector<8x32xf32> to vector<1x32xf32>
    %c0_160 = arith.constant 0 : index
    %c0_161 = arith.constant 0 : index
    %c0_162 = arith.constant 0 : index
    %377 = vector.load %arg19[%c0_160, %c0_161, %c0_162] : memref<1x1x32xf32, #tpu.memory_space<vmem>>, vector<1x1x32xf32>
    %378 = vector.shape_cast %377 : vector<1x1x32xf32> to vector<1x32xf32>
    %379 = vector.shape_cast %376 : vector<1x32xf32> to vector<1x1x32xf32>
    tpu.vector_store %arg19[%c0_160, %c0_161, %c0_162], %379 {strides = array<i32>} : memref<1x1x32xf32, #tpu.memory_space<vmem>>, vector<1x1x32xf32>,
    %c0_163 = arith.constant 0 : index
    %c0_164 = arith.constant 0 : index
    %380 = vector.load %arg17[%c0_163, %c0_164] : memref<32x128xf32, #tpu.memory_space<vmem>>, vector<32x128xf32>
    %cst_165 = arith.constant dense<0.000000e+00> : vector<1x128xf32>
    %381 = tpu.matmul %376, %380, %cst_165 {dimension_numbers = #tpu.dot_dimension_numbers<[1], [0], [0], [1], [0, 0, 1, 1], [], []>} : vector<1x32xf32>, vector<32x128xf32>, vector<1x128xf32> -> vector<1x128xf32>
    %c0_166 = arith.constant 0 : index
    %c0_167 = arith.constant 0 : index
    %382 = vector.load %arg18[%c0_166, %c0_167] : memref<1x128xf32, #tpu.memory_space<vmem>>, vector<1x128xf32>
    %383 = arith.addf %381, %382 : vector<1x128xf32>
    %c0_168 = arith.constant 0 : index
    %c0_169 = arith.constant 0 : index
    %c0_170 = arith.constant 0 : index
    %384 = vector.load %arg20[%c0_168, %c0_169, %c0_170] : memref<1x1x128xf32, #tpu.memory_space<vmem>>, vector<1x1x128xf32>
    %385 = vector.shape_cast %384 : vector<1x1x128xf32> to vector<1x128xf32>
    %386 = vector.shape_cast %383 : vector<1x128xf32> to vector<1x1x128xf32>
    tpu.vector_store %arg20[%c0_168, %c0_169, %c0_170], %386 {strides = array<i32>} : memref<1x1x128xf32, #tpu.memory_space<vmem>>, vector<1x1x128xf32>,
    return
  }
  func.func @transform_0(%arg0: i32) -> (i32, i32, i32) {
    %c0_i32 = arith.constant 0 : i32
    %c0_i32_0 = arith.constant 0 : i32
    %c0_i32_1 = arith.constant 0 : i32
    return %arg0, %c0_i32, %c0_i32_0 : i32, i32, i32
  }
  func.func @transform_1(%arg0: i32) -> (i32, i32, i32) {
    %c0_i32 = arith.constant 0 : i32
    %c0_i32_0 = arith.constant 0 : i32
    %c0_i32_1 = arith.constant 0 : i32
    return %arg0, %c0_i32, %c0_i32_0 : i32, i32, i32
  }
  func.func @transform_2(%arg0: i32) -> (i32, i32) {
    %c0_i32 = arith.constant 0 : i32
    %c0_i32_0 = arith.constant 0 : i32
    %c0_i32_1 = arith.constant 0 : i32
    return %c0_i32, %c0_i32_0 : i32, i32
  }
  func.func @transform_3(%arg0: i32) -> (i32, i32) {
    %c0_i32 = arith.constant 0 : i32
    %c0_i32_0 = arith.constant 0 : i32
    %c0_i32_1 = arith.constant 0 : i32
    return %c0_i32, %c0_i32_0 : i32, i32
  }
  func.func @transform_4(%arg0: i32) -> (i32, i32, i32) {
    %c0_i32 = arith.constant 0 : i32
    %c0_i32_0 = arith.constant 0 : i32
    %c0_i32_1 = arith.constant 0 : i32
    %c0_i32_2 = arith.constant 0 : i32
    return %c0_i32, %c0_i32_0, %c0_i32_1 : i32, i32, i32
  }
  func.func @transform_5(%arg0: i32) -> (i32, i32, i32) {
    %c0_i32 = arith.constant 0 : i32
    %c0_i32_0 = arith.constant 0 : i32
    %c0_i32_1 = arith.constant 0 : i32
    %c0_i32_2 = arith.constant 0 : i32
    return %c0_i32, %c0_i32_0, %c0_i32_1 : i32, i32, i32
  }
  func.func @transform_6(%arg0: i32) -> (i32, i32, i32) {
    %c0_i32 = arith.constant 0 : i32
    %c0_i32_0 = arith.constant 0 : i32
    %c0_i32_1 = arith.constant 0 : i32
    %c0_i32_2 = arith.constant 0 : i32
    return %c0_i32, %c0_i32_0, %c0_i32_1 : i32, i32, i32
  }
  func.func @transform_7(%arg0: i32) -> (i32, i32, i32) {
    %c0_i32 = arith.constant 0 : i32
    %c0_i32_0 = arith.constant 0 : i32
    %c0_i32_1 = arith.constant 0 : i32
    %c0_i32_2 = arith.constant 0 : i32
    return %c0_i32, %c0_i32_0, %c0_i32_1 : i32, i32, i32
  }
  func.func @transform_8(%arg0: i32) -> (i32, i32, i32) {
    %c0_i32 = arith.constant 0 : i32
    %c0_i32_0 = arith.constant 0 : i32
    %c0_i32_1 = arith.constant 0 : i32
    %c0_i32_2 = arith.constant 0 : i32
    return %c0_i32, %c0_i32_0, %c0_i32_1 : i32, i32, i32
  }
  func.func @transform_9(%arg0: i32) -> (i32, i32, i32) {
    %c0_i32 = arith.constant 0 : i32
    %c0_i32_0 = arith.constant 0 : i32
    %c0_i32_1 = arith.constant 0 : i32
    %c0_i32_2 = arith.constant 0 : i32
    return %c0_i32, %c0_i32_0, %c0_i32_1 : i32, i32, i32
  }
  func.func @transform_10(%arg0: i32) -> (i32, i32, i32) {
    %c0_i32 = arith.constant 0 : i32
    %c0_i32_0 = arith.constant 0 : i32
    %c0_i32_1 = arith.constant 0 : i32
    %c0_i32_2 = arith.constant 0 : i32
    return %c0_i32, %c0_i32_0, %c0_i32_1 : i32, i32, i32
  }
  func.func @transform_11(%arg0: i32) -> (i32, i32, i32) {
    %c0_i32 = arith.constant 0 : i32
    %c0_i32_0 = arith.constant 0 : i32
    %c0_i32_1 = arith.constant 0 : i32
    %c0_i32_2 = arith.constant 0 : i32
    return %c0_i32, %c0_i32_0, %c0_i32_1 : i32, i32, i32
  }
  func.func @transform_12(%arg0: i32) -> (i32, i32, i32) {
    %c0_i32 = arith.constant 0 : i32
    %c0_i32_0 = arith.constant 0 : i32
    %c0_i32_1 = arith.constant 0 : i32
    %c0_i32_2 = arith.constant 0 : i32
    return %c0_i32, %c0_i32_0, %c0_i32_1 : i32, i32, i32
  }
  func.func @transform_13(%arg0: i32) -> (i32, i32, i32) {
    %c0_i32 = arith.constant 0 : i32
    %c0_i32_0 = arith.constant 0 : i32
    %c0_i32_1 = arith.constant 0 : i32
    %c0_i32_2 = arith.constant 0 : i32
    return %c0_i32, %c0_i32_0, %c0_i32_1 : i32, i32, i32
  }
  func.func @transform_14(%arg0: i32) -> (i32, i32, i32) {
    %c0_i32 = arith.constant 0 : i32
    %c0_i32_0 = arith.constant 0 : i32
    %c0_i32_1 = arith.constant 0 : i32
    %c0_i32_2 = arith.constant 0 : i32
    return %c0_i32, %c0_i32_0, %c0_i32_1 : i32, i32, i32
  }
  func.func @transform_15(%arg0: i32) -> (i32, i32, i32) {
    %c0_i32 = arith.constant 0 : i32
    %c0_i32_0 = arith.constant 0 : i32
    %c0_i32_1 = arith.constant 0 : i32
    %c0_i32_2 = arith.constant 0 : i32
    return %c0_i32, %c0_i32_0, %c0_i32_1 : i32, i32, i32
  }
  func.func @transform_16(%arg0: i32) -> (i32, i32) {
    %c0_i32 = arith.constant 0 : i32
    %c0_i32_0 = arith.constant 0 : i32
    %c0_i32_1 = arith.constant 0 : i32
    return %c0_i32, %c0_i32_0 : i32, i32
  }
  func.func @transform_17(%arg0: i32) -> (i32, i32) {
    %c0_i32 = arith.constant 0 : i32
    %c0_i32_0 = arith.constant 0 : i32
    %c0_i32_1 = arith.constant 0 : i32
    return %c0_i32, %c0_i32_0 : i32, i32
  }
  func.func @transform_18(%arg0: i32) -> (i32, i32, i32) {
    %c0_i32 = arith.constant 0 : i32
    %c0_i32_0 = arith.constant 0 : i32
    %c0_i32_1 = arith.constant 0 : i32
    return %arg0, %c0_i32, %c0_i32_0 : i32, i32, i32
  }
  func.func @transform_19(%arg0: i32) -> (i32, i32, i32) {
    %c0_i32 = arith.constant 0 : i32
    %c0_i32_0 = arith.constant 0 : i32
    %c0_i32_1 = arith.constant 0 : i32
    return %arg0, %c0_i32, %c0_i32_0 : i32, i32, i32
  }
}

</mosaic_0001>

<bundles_post_ra>
// kernel: classifier_forward.1
= control target key start
LH: loop header
LB: loop body
LE: loop exit
PB: predicated region body
PF: predicated region fallthrough
CT: control target
= control target key end

     0   :  { %s4312_s0 = inlined_call_operand.vmem [shape: f32[2,8,32], index: 0, kind: input, shape index: {}]   ;;  %s4313_s1 = inlined_call_operand.vmem [shape: f32[2,1,8], index: 1, kind: input, shape index: {}]   ;;  %s4314_s2 = inlined_call_operand.vmem [shape: f32[1,32], index: 2, kind: input, shape index: {}]   ;;  %s4315_s3 = inlined_call_operand.vmem [shape: f32[1,32], index: 3, kind: input, shape index: {}]   ;;  %s4316_s4 = inlined_call_operand.vmem [shape: f32[2,32,96], index: 4, kind: input, shape index: {}]   ;;  %s4317_s5 = inlined_call_operand.vmem [shape: f32[2,1,96], index: 5, kind: input, shape index: {}]   ;;  %s4318_s6 = inlined_call_operand.vmem [shape: f32[2,32,32], index: 6, kind: input, shape index: {}]   ;;  %s4319_s7 = inlined_call_operand.vmem [shape: f32[2,1,32], index: 7, kind: input, shape index: {}]   ;;  %s4320_s8 = inlined_call_operand.vmem [shape: f32[2,1,32], index: 8, kind: input, shape index: {}]   ;;  %s4321_s9 = inlined_call_operand.vmem [shape: f32[2,1,32], index: 9, kind: input, shape index: {}]   ;;  %s4322_s10 = inlined_call_operand.vmem [shape: f32[2,32,64], index: 10, kind: input, shape index: {}]   ;;  %s4323_s11 = inlined_call_operand.vmem [shape: f32[2,1,64], index: 11, kind: input, shape index: {}]   ;;  %s4324_s12 = inlined_call_operand.vmem [shape: f32[2,64,32], index: 12, kind: input, shape index: {}]   ;;  %s4325_s13 = inlined_call_operand.vmem [shape: f32[2,1,32], index: 13, kind: input, shape index: {}]   ;;  %s4326_s14 = inlined_call_operand.vmem [shape: f32[2,1,32], index: 14, kind: input, shape index: {}]   ;;  %s4327_s15 = inlined_call_operand.vmem [shape: f32[2,1,32], index: 15, kind: input, shape index: {}]   ;;  %s4328_s16 = inlined_call_operand.vmem [shape: f32[32,128], index: 16, kind: input, shape index: {}]   ;;  %s4329_s17 = inlined_call_operand.vmem [shape: f32[1,128], index: 17, kind: input, shape index: {}]   ;;  %s4330_s18 = inlined_call_operand.hbm [shape: f32[2,1,32], index: 18, kind: output, shape index: {0}]   ;;  %s4331_s19 = inlined_call_operand.hbm [shape: f32[2,1,128], index: 19, kind: output, shape index: {1}]  }
   0x1   :  { %4349 = sst [smem:[#allocation11_spill]] %s4312_s0 }
   0x2   :  { %4350 = sst [smem:[#allocation12_spill]] %s4313_s1 }
   0x3   :  { %4351 = sst [smem:[#allocation13_spill]] %s4314_s2 }
   0x4   :  { %4352 = sst [smem:[#allocation14_spill]] %s4315_s3 }
   0x5   :  { %4353 = sst [smem:[#allocation15_spill]] %s4316_s4 }
   0x6   :  { %4354 = sst [smem:[#allocation16_spill]] %s4317_s5 }
   0x7   :  { %4355 = sst [smem:[#allocation17_spill]] %s4318_s6 }
   0x8   :  { %4356 = sst [smem:[#allocation18_spill]] %s4319_s7 }
   0x9   :  { %4357 = sst [smem:[#allocation19_spill]] %s4320_s8 }
   0xa   :  { %25 = vsyncpa [#allocation3], 0 }
   0xb   :  { %27 = vsyncpa [#allocation3 + $0x1], 0 }
   0xc   :  { %28 = vsyncpa [#allocation5], 0 }
   0xd   :  { %30 = vsyncpa [#allocation5 + $0x1], 0  ;;  %s3746_s0 = smov 0   ;;  %s3748_s30 = smov 0  }
   0xe   :  { %s3750_s20 = smov 0   ;;  %s3752_s21 = smov 0  }
   0xf LB: > { %4358 = sst [smem:[#allocation8_spill]] %s3622_s20  ;;  %s3767_s1 = sadd.s32 4294967295, %s3626_s21   ;;  %s3626_s21 = sphi %s3752_s21, %s4386_s21   ;;  %s3622_s20 = sphi %s3750_s20, %s4388_s20   ;;  %s3618_s30 = sphi %s3748_s30, %s4390_s30   ;;  %s3614_s0 = sphi %s3746_s0, %s4389_s0  }
  0x10   : > { %s3061_s22 = sadd.s32 4294967294, %s3626_s21   ;;  %s3771_s2 = sadd.s32 1, %s3626_s21  }
  0x11   : > { %4359 = sst [smem:[#allocation9_spill]] %s3771_s2  ;;  %s431_s23 = sadd.s32 1, %s3622_s20 }
  0x12   : > { %s428_s24 = ssub.s32 %s3626_s21, %s3771_s2  ;;  %p441_p0 = scmp.ne.s32.totalorder %s3622_s20, %s3618_s30 }
  0x13   : > { %p429_p1 = scmp.eq.s32.totalorder %s428_s24, 0  ;;  %p442_p2 = scmp.eq.s32.totalorder %s3767_s1, 1 }
  0x14   : > { %p447_p3 = scmp.ne.s32.totalorder %s3618_s30, %s3614_s0  ;;  %p448_p4 = scmp.eq.s32.totalorder %s3061_s22, 1 }
  0x15   : > { %s3782_s25 = scalar_select %p429_p1, %s3622_s20, %s431_s23  }
  0x16   : > { %p3784_p5 = por %p442_p2, %p441_p0  ;;  %p3788_p6 = por %p448_p4, %p447_p3 }
  0x17   : > { %4360 = sst [smem:[#allocation10_spill]] %s3782_s25  ;;  %p3064_p7 = scmp.ge.s32.totalorder %s3626_s21, 1 }
  0x18   : > { %p553_p8 = scmp.lt.s32.totalorder %s3626_s21, 3 }
  0x1a   : > { %p554_p9 = pnand %p3064_p7, %p553_p8 }
  0x1b   : > { %p614_p10 = scmp.lt.s32.totalorder (!%p554_p9), %s3767_s1, 1  ;;  %s4363_s23 = sld [smem:[#allocation11_spill]] (!%p554_p9) }
  0x1c   : > { %557 = sbr.rel (%p554_p9) target bundleno = 5815 (0x16b7), region = 92  ;;  %s4364_s4 = sld [smem:[#allocation15_spill]] (!%p554_p9) }
  0x1d   : > { %s4366_s20 = sld [smem:[#allocation14_spill]] (!%p554_p9)  ;;  %s4347_s29 = smov (!%p554_p9), 96  }
  0x1e   : > { %s4367_s5 = sld [smem:[#allocation16_spill]] (!%p554_p9)  ;;  %s4341_s25 = smov (!%p554_p9), 80  }
  0x1f   : > { %s4342_s2 = smov (!%p554_p9), 112   ;;  %s4336_s22 = smov (!%p554_p9), 72  }
  0x20   : > { %s4369_s6 = sld [smem:[#allocation17_spill]] (!%p554_p9) }
  0x21   : > { %s3796_s27 = scalar_select %p614_p10, %s3767_s1, 1  ;;  %vm625_vm0 = vcmask 261120   ;;  %v3628_v8 = vmov 0.0   ;;  %vm3629_vm1 = vmmov 0   ;;  %vm741_vm2 = vcmask 64512  }
  0x22   : > { %v657_v7 = vld [vmem:[%s4364_s4 + $0x18] sm:$0xff]  ;;  %3235 = vmatprep.subr.mxu0 %v3628_v8  ;;  %v656_v9 = vld [vmem:[%s4364_s4 + $0x10] sm:$0xff]  ;;  %3243 = vmatprep.mubr.msk.f32.mxu0 %vm3629_vm1, %v3628_v8  ;;  %v655_v10 = vld [vmem:[%s4364_s4 + $0x8] sm:$0xff]  ;;  %vm1425_vm3 = vcmask 130048   ;;  %vm1427_vm4 = vcmask 195584   ;;  %s4370_s7 = sld [smem:[#allocation18_spill]] }
  0x23   : > { %s3065_s28 = sshll.u32 %s3796_s27, 3  ;;  %3236 = vmatpush3.msra.mxu0 %v657_v7  ;;  %3246 = vmatprep.subr.mxu1 %v3628_v8  ;;  %v654_v11 = vld [vmem:[%s4364_s4] sm:$0xff]  ;;  %s4371_s8 = sld [smem:[#allocation19_spill]]  ;;  %vm1651_vm5 = vcmask 523264   ;;  %vm2858_vm6 = vcmask 253952  }
  0x24   : > { %s617_s24 = scalar_lea.vmem %s4363_s23, %s3065_s28  ;;  %3237 = vmatprep.subr.mxu0 %v3628_v8  ;;  %3248 = vmatprep.mubr.msk.f32.mxu1 %vm3629_vm1, %v3628_v8  ;;  %s4365_s28 = sld [smem:[#allocation13_spill]]  ;;  %v3067_v18 = vld [vmem:[%s4366_s20] ss:$0 sm:$0xff] }
  0x25   : > { %v621_v0 = vld [vmem:[%s617_s24] sm:$0xff]  ;;  %3238 = vmatpush3.msra.mxu0 %v656_v9  ;;  %s4335_s24 = smov 64   ;;  %s4368_s23 = sld [smem:[#allocation12_spill]] }
  0x26   : > { %v626_v1 = vsel %vm625_vm0, %v621_v0, 0.0  ;;  %3239 = vmatprep.subr.mxu0 %v3628_v8  ;;  %v3068_v21 = vld [vmem:[%s4367_s5] ss:$0 sm:$0xff] }
  0x27   : > { %627 = vadd.xlane.f32.xlu0 %v626_v1  ;;  %3240 = vmatpush3.msra.mxu0 %v655_v10 }
  0x28   : > { %3241 = vmatprep.subr.mxu0 %v3628_v8 }
  0x29   : > { %3242 = vmatpush3.msra.mxu0 %v654_v11 }
  0x2a   : > { %3266 = vmatprep.subr.mxu0 %v3628_v8  ;;  %v3066_v16 = vld [vmem:[%s4365_s28] ss:$0 sm:$0xff]  ;;  %s3632_s28 = smov 88  }
  0x2b   : > { %s620_s20 = scalar_lea.vmem %s4368_s23, %s3796_s27  ;;  %s4343_s27 = smov 120  }
  0x2c   : > { %v3860_v27 = vld [vmem:[%s620_s20] ss:$0 sm:$0xff]  ;;  %s4340_s23 = smov 104   ;;  %s4339_s20 = smov 48  }
  0xb0   : > { %v628_v2 = vpop.xlane.xlu0 %627 }
  0xb1   : > { %v630_v3 = vmul.f32 0.03125, %v628_v2 }
  0xb3   : > { %v631_v4 = vsub.f32 %v621_v0, %v630_v3 }
  0xb5   : > { %v632_v5 = vmul.f32 %v631_v4, %v631_v4 }
  0xb7   : > { %v633_v6 = vsel %vm625_vm0, %v632_v5, 0.0 }
  0xb8   : > { %634 = vadd.xlane.f32.xlu0 %v633_v6 }
 0x141   : > { %v635_v12 = vpop.xlane.xlu0 %634 }
 0x142   : > { %v636_v13 = vmul.f32 0.03125, %v635_v12 }
 0x144   : > { %v637_v14 = vadd.f32 1e-12, %v636_v13 }
 0x146   : > { %3490 = vrsqrt.f32 %v637_v14 }
 0x153   : > { %v3491_v15 = vpop.eup %3490 }
 0x154   : > { %v639_v17 = vmul.f32 %v3491_v15, %v631_v4 }
 0x156   : > { %v646_v19 = vmul.f32 %v3066_v16, %v639_v17 }
 0x158   : > { %v3832_v20 = vadd.f32 %v3067_v18, %v646_v19 }
 0x15a   : > { %3244 = vmatmul.mubr.msk.f32.vlgmr.msra.gmra.mxu0 %vm625_vm0, %v3832_v20 }
 0x15b   : > { %3268 = vmatprep.mubr.msk.f32.mxu0 %vm3629_vm1, %v3628_v8 }
 0x21a   : > { %v734_v22 = vpop.f32.mrf.mxu0 }
 0x21b   : > { %v3841_v23 = vadd.f32 %v3068_v21, %v734_v22 }
 0x21c   : > { %v3245_v24 = vpop.f32.mrf.mxu0 }
 0x21d   : > { %835 = vrot.lane.b32.xlu0 %v3841_v23, %s4335_s24  ;;  %739 = vrot.lane.b32.xlu1 %v3841_v23, %s4347_s29  ;;  %s4337_s24 = smov 56   ;;  %s4379_s29 = smov 48  }
 0x221   : > { %913 = vrot.lane.b32.xlu0 %v3841_v23, %s3632_s28 }
 0x28f   : > { %v740_v25 = vpop.permute.xlu1 %739  ;;  %v836_v26 = vpop.permute.xlu0 %835 }
 0x290   : > { %3247 = vmatpush3.xpose.msk.msra.mxu1 %vm741_vm2, %v740_v25 }
 0x291   : > { %3251 = vmatprep.subr.mxu1 %v3628_v8 }
 0x293   : > { %3249 = vmatmul.mubr.msk.f32.vlgmr.msra.gmra.mxu1 %vm741_vm2, %v3841_v23  ;;  %v914_v39 = vpop.permute.xlu0 %913 }
 0x294   : > { %3252 = vmatpush3.msra.mxu1 %v836_v26  ;;  %3253 = vmatprep.mubr.msk.f32.mxu1 %vm3629_vm1, %v3628_v8 }
 0x295   : > { %3256 = vmatprep.subr.mxu1 %v3628_v8 }
 0x353   : > { %v812_v28 = vpop.f32.mrf.mxu1 }
 0x354   : > { %v816_v29 = vmul.f32 0.35355338, %v812_v28 }
 0x355   : > { %v3250_v30 = vpop.f32.mrf.mxu1 }
 0x356   : > { %v823_v31 = vadd.f32 %v3860_v27, %v816_v29  ;;  %v1432_v30 = vld [vmem:[%s4369_s6 + $0x18] sm:$0xff] }
 0x358   : > { %v824_v32 = vsel %vm741_vm2, %v823_v31, -inf }
 0x359   : > { %825 = vmax.xlane.f32.xlu1 %v824_v32  ;;  %v1430_v32 = vld [vmem:[%s4369_s6 + $0x8] sm:$0xff] }
 0x36a   : > { %1080 = vrot.lane.b32.xlu1 %v3841_v23, %s4341_s25  ;;  %s4345_s25 = smov 16  }
 0x3e2   : > { %v826_v33 = vpop.xlane.xlu1 %825 }
 0x3e3   : > { %v827_v34 = vsub.f32 %v823_v31, %v826_v33  ;;  %v1431_v31 = vld [vmem:[%s4369_s6 + $0x10] sm:$0xff]  ;;  %v1429_v33 = vld [vmem:[%s4369_s6] sm:$0xff] }
 0x3e5   : > { %v828_v35 = vmul.f32 1.442695, %v827_v34 }
 0x3e6   : > { %v1081_v36 = vpop.permute.xlu1 %1080 }
 0x3e7   : > { %3492 = vpow2.f32 %v828_v35  ;;  %3267 = vmatpush3.xpose.msk.msra.mxu0 %vm741_vm2, %v1081_v36 }
 0x3e8   : > { %3276 = vmatprep.subr.mxu0 %v3628_v8 }
 0x3f4   : > { %v3493_v37 = vpop.eup %3492 }
 0x3f5   : > { %v830_v38 = vsel %vm741_vm2, %v3493_v37, 0.0 }
 0x3f6   : > { %831 = vadd.xlane.f32.xlu0 %v830_v38 }
 0x40c   : > { %911 = vrot.lane.b32.xlu0 %v3841_v23, %s4343_s27  ;;  %s4372_s27 = smov 96  }
 0x410   : > { %1078 = vrot.lane.b32.xlu0 %v3841_v23, %s4342_s2  ;;  %s4344_s2 = smov 24  }
 0x414   : > { %1247 = vrot.lane.b32.xlu0 %v3841_v23, %s4336_s22  ;;  %s4338_s22 = smov 40  }
 0x418   : > { %1245 = vrot.lane.b32.xlu0 %v3841_v23, %s4340_s23  ;;  %s4373_s23 = smov 120  }
 0x47f   : > { %v832_v40 = vpop.xlane.xlu0 %831 }
 0x480   : > { %3494 = vrcp.f32 %v832_v40 }
 0x483   : > { %v912_v41 = vpop.permute.xlu0 %911 }
 0x487   : > { %v1079_v42 = vpop.permute.xlu0 %1078 }
 0x488   : > { %3269 = vmatmul.mubr.msk.f32.vlgmr.msra.gmra.mxu0 %vm741_vm2, %v1079_v42 }
 0x489   : > { %3278 = vmatprep.mubr.msk.f32.mxu0 %vm3629_vm1, %v3628_v8 }
 0x48b   : > { %v1248_v43 = vpop.permute.xlu0 %1247 }
 0x48c   : > { %3277 = vmatpush3.xpose.msk.msra.mxu0 %vm741_vm2, %v1248_v43 }
 0x48d   : > { %v3495_v44 = vpop.eup %3494  ;;  %3286 = vmatprep.subr.mxu0 %v3628_v8 }
 0x48e   : > { %v834_v45 = vmul.f32 %v3495_v44, %v3493_v37 }
 0x48f   : > { %v1246_v46 = vpop.permute.xlu0 %1245 }
 0x490   : > { %3254 = vmatmul.mubr.msk.f32.vlgmr.msra.gmra.mxu1 %vm741_vm2, %v834_v45  ;;  %3279 = vmatmul.mubr.msk.f32.vlgmr.msra.gmra.mxu0 %vm741_vm2, %v1246_v46  ;;  %v3083_v46 = vld [vmem:[%s4370_s7] ss:$0 sm:$0xff] }
 0x491   : > { %3257 = vmatpush3.xpose.msk.msra.mxu1 %vm741_vm2, %v914_v39  ;;  %3258 = vmatprep.mubr.msk.f32.mxu1 %vm3629_vm1, %v3628_v8 }
 0x492   : > { %3261 = vmatprep.subr.mxu1 %v3628_v8  ;;  %3294 = vmatprep.mubr.msk.f32.mxu0 %vm3629_vm1, %v3628_v8 }
 0x493   : > { %3287 = vmatpush3.msra.mxu0 %v1432_v30 }
 0x494   : > { %3259 = vmatmul.mubr.msk.f32.vlgmr.msra.gmra.mxu1 %vm741_vm2, %v912_v41  ;;  %3288 = vmatprep.subr.mxu0 %v3628_v8 }
 0x495   : > { %3263 = vmatprep.mubr.msk.f32.mxu1 %vm3629_vm1, %v3628_v8  ;;  %3289 = vmatpush3.msra.mxu0 %v1431_v31 }
 0x496   : > { %3290 = vmatprep.subr.mxu0 %v3628_v8 }
 0x497   : > { %3291 = vmatpush3.msra.mxu0 %v1430_v32 }
 0x498   : > { %3292 = vmatprep.subr.mxu0 %v3628_v8 }
 0x499   : > { %3293 = vmatpush3.msra.mxu0 %v1429_v33 }
 0x49a   : > { %3308 = vmatprep.subr.mxu0 %v3628_v8 }
 0x548   : > { %v1152_v47 = vpop.f32.mrf.mxu0 }
 0x549   : > { %v1156_v48 = vmul.f32 0.35355338, %v1152_v47 }
 0x54a   : > { %v3270_v49 = vpop.f32.mrf.mxu0 }
 0x54b   : > { %v1157_v50 = vadd.f32 %v3860_v27, %v1156_v48 }
 0x54d   : > { %v1158_v51 = vsel %vm741_vm2, %v1157_v50, -inf }
 0x54e   : > { %1159 = vmax.xlane.f32.xlu1 %v1158_v51 }
 0x550   : > { %v3895_v52 = vpop.f32.mrf.mxu1  ;;  %v1319_v53 = vpop.f32.mrf.mxu0 }
 0x551   : > { %v1323_v57 = vmul.f32 0.35355338, %v1319_v53 }
 0x552   : > { %v3255_v54 = vpop.f32.mrf.mxu1  ;;  %v3280_v55 = vpop.f32.mrf.mxu0 }
 0x553   : > { %v1324_v62 = vadd.f32 %v3860_v27, %v1323_v57  ;;  %v1546_v57 = vld [vmem:[%s4322_s10 + $0x18] sm:$0xff] }
 0x554   : > { %v985_v56 = vpop.f32.mrf.mxu1 }
 0x555   : > { %v989_v58 = vmul.f32 0.35355338, %v985_v56  ;;  %v1325_v63 = vsel %vm741_vm2, %v1324_v62, -inf }
 0x556   : > { %v3260_v59 = vpop.f32.mrf.mxu1 }
 0x557   : > { %v990_v60 = vadd.f32 %v3860_v27, %v989_v58  ;;  %v1545_v58 = vld [vmem:[%s4322_s10 + $0x10] sm:$0xff]  ;;  %v1543_v59 = vld [vmem:[%s4322_s10] sm:$0xff] }
 0x559   : > { %v991_v61 = vsel %vm741_vm2, %v990_v60, -inf }
 0x55a   : > { %992 = vmax.xlane.f32.xlu0 %v991_v61 }
 0x55e   : > { %1326 = vmax.xlane.f32.xlu0 %v1325_v63 }
 0x5d7   : > { %v1160_v0 = vpop.xlane.xlu1 %1159 }
 0x5d8   : > { %v1161_v1 = vsub.f32 %v1157_v50, %v1160_v0  ;;  %v3085_v0 = vld [vmem:[%s4371_s8] ss:$0 sm:$0xff] }
 0x5da   : > { %v1162_v2 = vmul.f32 1.442695, %v1161_v1 }
 0x5dc   : > { %3496 = vpow2.f32 %v1162_v2  ;;  %v3086_v2 = vld [vmem:[%s4321_s9] ss:$0 sm:$0xff] }
 0x5e3   : > { %v993_v3 = vpop.xlane.xlu0 %992 }
 0x5e4   : > { %v994_v4 = vsub.f32 %v990_v60, %v993_v3 }
 0x5e6   : > { %v995_v5 = vmul.f32 1.442695, %v994_v4 }
 0x5e7   : > { %v1327_v6 = vpop.xlane.xlu0 %1326 }
 0x5e8   : > { %3498 = vpow2.f32 %v995_v5  ;;  %v1328_v7 = vsub.f32 %v1324_v62, %v1327_v6  ;;  %v1643_v5 = vld [vmem:[%s4324_s12 + $0x38] sm:$0xff]  ;;  %v1642_v6 = vld [vmem:[%s4324_s12 + $0x30] sm:$0xff] }
 0x5e9   : > { %v3497_v9 = vpop.eup %3496 }
 0x5ea   : > { %v1329_v10 = vmul.f32 1.442695, %v1328_v7  ;;  %v1164_v11 = vsel %vm741_vm2, %v3497_v9, 0.0  ;;  %v1641_v7 = vld [vmem:[%s4324_s12 + $0x28] sm:$0xff] }
 0x5eb   : > { %1165 = vadd.xlane.f32.xlu0 %v1164_v11  ;;  %v1638_v11 = vld [vmem:[%s4324_s12 + $0x10] sm:$0xff] }
 0x5ec   : > { %3500 = vpow2.f32 %v1329_v10  ;;  %v1639_v10 = vld [vmem:[%s4324_s12 + $0x18] sm:$0xff] }
 0x5f5   : > { %v3499_v12 = vpop.eup %3498 }
 0x5f6   : > { %v997_v13 = vsel %vm741_vm2, %v3499_v12, 0.0 }
 0x5f7   : > { %998 = vadd.xlane.f32.xlu0 %v997_v13  ;;  %v1636_v13 = vld [vmem:[%s4324_s12] sm:$0xff] }
 0x5f9   : > { %v3501_v14 = vpop.eup %3500 }
 0x5fa   : > { %v1331_v15 = vsel %vm741_vm2, %v3501_v14, 0.0 }
 0x5fb   : > { %1332 = vadd.xlane.f32.xlu1 %v1331_v15 }
 0x60c   : > { %1169 = vrot.lane.b32.xlu1 %v3841_v23, %s4339_s20  ;;  %s4376_s20 = smov 104  }
 0x60d   : > { %1002 = vrot.lane.b32.xlu0 %v3841_v23, %s4337_s24  ;;  %s4377_s24 = smov 72  }
 0x610   : > { %1336 = vrot.lane.b32.xlu1 %v3841_v23, %s4338_s22  ;;  %s4346_s22 = smov 8  }
 0x674   : > { %v1166_v16 = vpop.xlane.xlu0 %1165 }
 0x680   : > { %v999_v17 = vpop.xlane.xlu0 %998 }
 0x681   : > { %3502 = vrcp.f32 %v999_v17 }
 0x682   : > { %3504 = vrcp.f32 %v1166_v16 }
 0x684   : > { %v1333_v18 = vpop.xlane.xlu1 %1332  ;;  %v1003_v19 = vpop.permute.xlu0 %1002 }
 0x685   : > { %3262 = vmatpush3.msra.mxu1 %v1003_v19  ;;  %3506 = vrcp.f32 %v1333_v18 }
 0x686   : > { %3271 = vmatprep.subr.mxu1 %v3628_v8 }
 0x688   : > { %v1170_v22 = vpop.permute.xlu1 %1169 }
 0x68c   : > { %v1337_v28 = vpop.permute.xlu1 %1336 }
 0x68e   : > { %v3503_v21 = vpop.eup %3502 }
 0x68f   : > { %v1001_v24 = vmul.f32 %v3503_v21, %v3499_v12  ;;  %v3505_v25 = vpop.eup %3504  ;;  %v1637_v12 = vld [vmem:[%s4324_s12 + $0x8] sm:$0xff] }
 0x690   : > { %v1168_v23 = vmul.f32 %v3505_v25, %v3497_v9  ;;  %v1640_v9 = vld [vmem:[%s4324_s12 + $0x20] sm:$0xff] }
 0x691   : > { %3264 = vmatmul.mubr.msk.f32.vlgmr.msra.gmra.mxu1 %vm741_vm2, %v1001_v24 }
 0x692   : > { %3272 = vmatpush3.msra.mxu1 %v1170_v22  ;;  %3273 = vmatprep.mubr.msk.f32.mxu1 %vm3629_vm1, %v3628_v8  ;;  %v3507_v26 = vpop.eup %3506 }
 0x693   : > { %3281 = vmatprep.subr.mxu1 %v3628_v8  ;;  %v1335_v29 = vmul.f32 %v3507_v26, %v3501_v14  ;;  %v3087_v14 = vld [vmem:[%s4323_s11] ss:$0 sm:$0xff] }
 0x695   : > { %3274 = vmatmul.mubr.msk.f32.vlgmr.msra.gmra.mxu1 %vm741_vm2, %v1168_v23 }
 0x696   : > { %3282 = vmatpush3.msra.mxu1 %v1337_v28  ;;  %3283 = vmatprep.mubr.msk.f32.mxu1 %vm3629_vm1, %v3628_v8 }
 0x697   : > { %3297 = vmatprep.subr.mxu1 %v3628_v8 }
 0x699   : > { %3284 = vmatmul.mubr.msk.f32.vlgmr.msra.gmra.mxu1 %vm741_vm2, %v1335_v29  ;;  %v3089_v29 = vld [vmem:[%s4325_s13] ss:$0 sm:$0xff] }
 0x69a   : > { %3305 = vmatprep.mubr.msk.f32.mxu1 %vm3629_vm1, %v3628_v8  ;;  %3298 = vmatpush3.msra.mxu1 %v1546_v57 }
 0x69b   : > { %3299 = vmatprep.subr.mxu1 %v3628_v8 }
 0x69c   : > { %3300 = vmatpush3.msra.mxu1 %v1545_v58 }
 0x69d   : > { %3301 = vmatprep.subr.mxu1 %v3628_v8 }
 0x751   : > { %v1074_v34 = vpop.f32.mrf.mxu1 }
 0x752   : > { %1413 = vrot.lane.b32.xlu1 %v1074_v34, %s4346_s22  ;;  %s4380_s22 = smov 40  }
 0x753   : > { %v3265_v35 = vpop.f32.mrf.mxu1 }
 0x755   : > { %v1241_v36 = vpop.f32.mrf.mxu1 }
 0x756   : > { %1417 = vrot.lane.b32.xlu0 %v1241_v36, %s4345_s25  ;;  %s4374_s25 = smov 112  }
 0x757   : > { %v3275_v37 = vpop.f32.mrf.mxu1 }
 0x759   : > { %v1408_v38 = vpop.f32.mrf.mxu1 }
 0x75a   : > { %1421 = vrot.lane.b32.xlu1 %v1408_v38, %s4344_s2  ;;  %s4375_s2 = smov 80  }
 0x75b   : > { %v3285_v39 = vpop.f32.mrf.mxu1 }
 0x7c4   : > { %v1414_v40 = vpop.permute.xlu1 %1413 }
 0x7c5   : > { %v1424_v42 = vsel %vm741_vm2, %v3895_v52, %v1414_v40  ;;  %v3096_v40 = vld [vmem:[%s4364_s4 + $0x38] sm:$0xff] }
 0x7c8   : > { %v1418_v41 = vpop.permute.xlu0 %1417 }
 0x7c9   : > { %v1426_v43 = vsel %vm1425_vm3, %v1424_v42, %v1418_v41  ;;  %v3095_v41 = vld [vmem:[%s4364_s4 + $0x30] sm:$0xff]  ;;  %v3094_v42 = vld [vmem:[%s4364_s4 + $0x28] sm:$0xff] }
 0x7cc   : > { %v1422_v44 = vpop.permute.xlu1 %1421 }
 0x7cd   : > { %v1428_v45 = vsel %vm1427_vm4, %v1426_v43, %v1422_v44  ;;  %v3093_v43 = vld [vmem:[%s4364_s4 + $0x20] sm:$0xff] }
 0x7ce   : > { %3295 = vmatmul.mubr.msk.f32.vlgmr.msra.gmra.mxu0 %vm625_vm0, %v1428_v45 }
 0x7cf   : > { %3324 = vmatprep.mubr.msk.f32.mxu0 %vm3629_vm1, %v3628_v8  ;;  %3309 = vmatpush3.msra.mxu0 %v1643_v5 }
 0x7d0   : > { %3310 = vmatprep.subr.mxu0 %v3628_v8 }
 0x7d1   : > { %3311 = vmatpush3.msra.mxu0 %v1642_v6 }
 0x7d2   : > { %3312 = vmatprep.subr.mxu0 %v3628_v8 }
 0x7d3   : > { %3313 = vmatpush3.msra.mxu0 %v1641_v7 }
 0x7d4   : > { %3314 = vmatprep.subr.mxu0 %v3628_v8 }
 0x7d5   : > { %3315 = vmatpush3.msra.mxu0 %v1640_v9 }
 0x7d6   : > { %3316 = vmatprep.subr.mxu0 %v3628_v8 }
 0x7d7   : > { %3317 = vmatpush3.msra.mxu0 %v1639_v10 }
 0x7d8   : > { %3318 = vmatprep.subr.mxu0 %v3628_v8 }
 0x7d9   : > { %3319 = vmatpush3.msra.mxu0 %v1638_v11 }
 0x7da   : > { %3320 = vmatprep.subr.mxu0 %v3628_v8 }
 0x7db   : > { %3321 = vmatpush3.msra.mxu0 %v1637_v12 }
 0x7dc   : > { %3322 = vmatprep.subr.mxu0 %v3628_v8 }
 0x7dd   : > { %3323 = vmatpush3.msra.mxu0 %v1636_v13 }
 0x7de   : > { %3348 = vmatprep.subr.mxu0 %v3628_v8 }
 0x88e   : > { %v1509_v47 = vpop.f32.mrf.mxu0 }
 0x88f   : > { %v1510_v48 = vadd.f32 %v3083_v46, %v1509_v47 }
 0x890   : > { %v3296_v49 = vpop.f32.mrf.mxu0 }
 0x891   : > { %v1513_v50 = vadd.f32 %v1510_v48, %v3832_v20  ;;  %v1544_v20 = vld [vmem:[%s4322_s10 + $0x8] sm:$0xff]  ;;  %v3091_v48 = vld [vmem:[%s4326_s14] ss:$0 sm:$0xff] }
 0x892   : > { %3302 = vmatpush3.msra.mxu1 %v1544_v20 }
 0x893   : > { %v1516_v51 = vsel %vm625_vm0, %v1513_v50, 0.0  ;;  %3303 = vmatprep.subr.mxu1 %v3628_v8 }
 0x894   : > { %1517 = vadd.xlane.f32.xlu0 %v1516_v51  ;;  %3304 = vmatpush3.msra.mxu1 %v1543_v59 }
 0x895   : > { %3327 = vmatprep.subr.mxu1 %v3628_v8 }
 0x91d   : > { %v1518_v52 = vpop.xlane.xlu0 %1517 }
 0x91e   : > { %v1519_v53 = vmul.f32 0.03125, %v1518_v52 }
 0x920   : > { %v1520_v54 = vsub.f32 %v1513_v50, %v1519_v53  ;;  %v3092_v50 = vld [vmem:[%s4327_s15] ss:$0 sm:$0xff]  ;;  %v3098_v53 = vld [vmem:[%s4367_s5 + $0x1] ss:$0 sm:$0xff] }
 0x922   : > { %v1521_v55 = vmul.f32 %v1520_v54, %v1520_v54 }
 0x924   : > { %v1522_v56 = vsel %vm625_vm0, %v1521_v55, 0.0 }
 0x925   : > { %1523 = vadd.xlane.f32.xlu1 %v1522_v56 }
 0x9ae   : > { %v1524_v60 = vpop.xlane.xlu1 %1523 }
 0x9af   : > { %v1525_v61 = vmul.f32 0.03125, %v1524_v60 }
 0x9b1   : > { %v1526_v62 = vadd.f32 1e-12, %v1525_v61 }
 0x9b3   : > { %3508 = vrsqrt.f32 %v1526_v62 }
 0x9c0   : > { %v3509_v63 = vpop.eup %3508 }
 0x9c1   : > { %v1528_v1 = vmul.f32 %v3509_v63, %v1520_v54 }
 0x9c3   : > { %v1535_v3 = vmul.f32 %v3085_v0, %v1528_v1 }
 0x9c5   : > { %v1542_v4 = vadd.f32 %v3086_v2, %v1535_v3 }
 0x9c7   : > { %3306 = vmatmul.mubr.msk.f32.vlgmr.msra.gmra.mxu1 %vm625_vm0, %v1542_v4 }
 0x9c8   : > { %3335 = vmatprep.mubr.msk.f32.mxu1 %vm3629_vm1, %v3628_v8  ;;  %3328 = vmatpush3.msra.mxu1 %v3096_v40 }
 0x9c9   : > { %3329 = vmatprep.subr.mxu1 %v3628_v8 }
 0x9ca   : > { %3330 = vmatpush3.msra.mxu1 %v3095_v41 }
 0x9cb   : > { %3331 = vmatprep.subr.mxu1 %v3628_v8 }
 0x9cc   : > { %3332 = vmatpush3.msra.mxu1 %v3094_v42 }
 0x9cd   : > { %3333 = vmatprep.subr.mxu1 %v3628_v8 }
 0x9ce   : > { %3334 = vmatpush3.msra.mxu1 %v3093_v43 }
 0x9cf   : > { %3338 = vmatprep.subr.mxu1 %v3628_v8 }
 0xa87   : > { %v1623_v15 = vpop.f32.mrf.mxu1 }
 0xa88   : > { %v1624_v16 = vadd.f32 %v3087_v14, %v1623_v15 }
 0xa89   : > { %v3307_v17 = vpop.f32.mrf.mxu1 }
 0xa8a   : > { %v1628_v18 = vmul.f32 0.044715, %v1624_v16  ;;  %v1627_v23 = vmul.f32 0.5, %v1624_v16 }
 0xa8c   : > { %v1629_v19 = vmul.f32 %v1628_v18, %v1624_v16 }
 0xa8e   : > { %v1630_v21 = vmul.f32 %v1629_v19, %v1624_v16 }
 0xa90   : > { %v1631_v22 = vadd.f32 %v1630_v21, %v1624_v16 }
 0xa92   : > { %v1632_v24 = vmul.f32 0.7978846, %v1631_v22 }
 0xa94   : > { %3510 = vtanh.f32 %v1632_v24 }
 0xaa1   : > { %v3511_v25 = vpop.eup %3510 }
 0xaa2   : > { %v1634_v26 = vadd.f32 1.0, %v3511_v25 }
 0xaa4   : > { %v1635_v28 = vmul.f32 %v1634_v26, %v1627_v23 }
 0xaa6   : > { %3325 = vmatmul.mubr.msk.f32.vlgmr.msra.gmra.mxu0 %vm1651_vm5, %v1635_v28 }
 0xaa7   : > { %3350 = vmatprep.mubr.msk.f32.mxu0 %vm3629_vm1, %v3628_v8 }
 0xb66   : > { %v1721_v30 = vpop.f32.mrf.mxu0 }
 0xb67   : > { %v1722_v31 = vadd.f32 %v3089_v29, %v1721_v30 }
 0xb68   : > { %v3326_v32 = vpop.f32.mrf.mxu0 }
 0xb69   : > { %v1725_v33 = vadd.f32 %v1722_v31, %v1542_v4 }
 0xb6b   : > { %v1728_v34 = vsel %vm625_vm0, %v1725_v33, 0.0 }
 0xb6c   : > { %1729 = vadd.xlane.f32.xlu0 %v1728_v34 }
 0xbf5   : > { %v1730_v35 = vpop.xlane.xlu0 %1729 }
 0xbf6   : > { %v1731_v36 = vmul.f32 0.03125, %v1730_v35 }
 0xbf8   : > { %v1732_v37 = vsub.f32 %v1725_v33, %v1731_v36 }
 0xbfa   : > { %v1733_v38 = vmul.f32 %v1732_v37, %v1732_v37 }
 0xbfc   : > { %v1734_v39 = vsel %vm625_vm0, %v1733_v38, 0.0 }
 0xbfd   : > { %1735 = vadd.xlane.f32.xlu0 %v1734_v39 }
 0xc86   : > { %v1736_v44 = vpop.xlane.xlu0 %1735 }
 0xc87   : > { %v1737_v45 = vmul.f32 0.03125, %v1736_v44 }
 0xc89   : > { %v1738_v46 = vadd.f32 1e-12, %v1737_v45 }
 0xc8b   : > { %3512 = vrsqrt.f32 %v1738_v46 }
 0xc98   : > { %v3513_v47 = vpop.eup %3512 }
 0xc99   : > { %v1740_v49 = vmul.f32 %v3513_v47, %v1732_v37 }
 0xc9b   : > { %v1747_v51 = vmul.f32 %v3091_v48, %v1740_v49 }
 0xc9d   : > { %v4044_v52 = vadd.f32 %v3092_v50, %v1747_v51 }
 0xc9f   : > { %3336 = vmatmul.mubr.msk.f32.vlgmr.msra.gmra.mxu1 %vm625_vm0, %v4044_v52 }
 0xca0   : > { %3340 = vmatprep.mubr.msk.f32.mxu1 %vm3629_vm1, %v3628_v8 }
 0xd5f   : > { %v1837_v54 = vpop.f32.mrf.mxu1 }
 0xd60   : > { %v4053_v55 = vadd.f32 %v3098_v53, %v1837_v54 }
 0xd61   : > { %v3337_v56 = vpop.f32.mrf.mxu1 }
 0xd62   : > { %2009 = vrot.lane.b32.xlu1 %v4053_v55, %s3632_s28  ;;  %1842 = vrot.lane.b32.xlu0 %v4053_v55, %s4372_s27  ;;  %s4378_s28 = smov 64   ;;  %s4381_s27 = smov 56  }
 0xd66   : > { %2007 = vrot.lane.b32.xlu1 %v4053_v55, %s4373_s23  ;;  %2174 = vrot.lane.b32.xlu0 %v4053_v55, %s4374_s25  ;;  %s4383_s23 = smov 16   ;;  %s4384_s25 = smov 24  }
 0xd6a   : > { %2176 = vrot.lane.b32.xlu1 %v4053_v55, %s4375_s2  ;;  %2341 = vrot.lane.b32.xlu0 %v4053_v55, %s4376_s20  ;;  %s3644_s20 = smov [#allocation2]  }
 0xd6b   : > { %s3540_s5 = sshll.u32 %s3644_s20, 4  ;;  %s3541_s5 = int_to_ptr.vmem [resolvable:$false] %s3540_s5 }
 0xd6e   : > { %2343 = vrot.lane.b32.xlu1 %v4053_v55, %s4377_s24 }
 0xdd4   : > { %v2010_v57 = vpop.permute.xlu1 %2009  ;;  %v1843_v58 = vpop.permute.xlu0 %1842 }
 0xdd5   : > { %3339 = vmatpush3.xpose.msk.msra.mxu1 %vm741_vm2, %v1843_v58  ;;  %3349 = vmatpush3.xpose.msk.msra.mxu0 %vm741_vm2, %v2010_v57  ;;  %v3115_v58 = vld [vmem:[%s4369_s6 + $0x38] sm:$0xff] }
 0xdd6   : > { %3358 = vmatprep.subr.mxu0 %v3628_v8  ;;  %3343 = vmatprep.subr.mxu1 %v3628_v8 }
 0xdd8   : > { %v2008_v20 = vpop.permute.xlu1 %2007  ;;  %3341 = vmatmul.mubr.msk.f32.vlgmr.msra.gmra.mxu1 %vm741_vm2, %v4053_v55  ;;  %v2175_v60 = vpop.permute.xlu0 %2174 }
 0xdd9   : > { %3351 = vmatmul.mubr.msk.f32.vlgmr.msra.gmra.mxu0 %vm741_vm2, %v2008_v20  ;;  %3345 = vmatprep.mubr.msk.f32.mxu1 %vm3629_vm1, %v3628_v8  ;;  %v3114_v20 = vld [vmem:[%s4369_s6 + $0x30] sm:$0xff] }
 0xdda   : > { %3360 = vmatprep.mubr.msk.f32.mxu0 %vm3629_vm1, %v3628_v8 }
 0xddc   : > { %v2177_v59 = vpop.permute.xlu1 %2176  ;;  %v2342_v62 = vpop.permute.xlu0 %2341 }
 0xddd   : > { %3359 = vmatpush3.xpose.msk.msra.mxu0 %vm741_vm2, %v2177_v59  ;;  %v3113_v59 = vld [vmem:[%s4369_s6 + $0x28] sm:$0xff] }
 0xdde   : > { %3368 = vmatprep.subr.mxu0 %v3628_v8 }
 0xde0   : > { %v2344_v61 = vpop.permute.xlu1 %2343  ;;  %3361 = vmatmul.mubr.msk.f32.vlgmr.msra.gmra.mxu0 %vm741_vm2, %v2175_v60 }
 0xde1   : > { %3369 = vmatpush3.xpose.msk.msra.mxu0 %vm741_vm2, %v2344_v61  ;;  %3370 = vmatprep.mubr.msk.f32.mxu0 %vm3629_vm1, %v3628_v8  ;;  %v3112_v61 = vld [vmem:[%s4369_s6 + $0x20] sm:$0xff]  ;;  %s3542_s6 = scalar_lea.vmem %s3541_s5, 32 }
 0xde2   : > { %3378 = vmatprep.subr.mxu0 %v3628_v8 }
 0xde4   : > { %3371 = vmatmul.mubr.msk.f32.vlgmr.msra.gmra.mxu0 %vm741_vm2, %v2342_v62 }
 0xde5   : > { %3386 = vmatprep.mubr.msk.f32.mxu0 %vm3629_vm1, %v3628_v8  ;;  %3379 = vmatpush3.msra.mxu0 %v3115_v58  ;;  %v3139_v58 = vld [vmem:[%s4325_s13 + $0x1] ss:$0 sm:$0xff] }
 0xde6   : > { %3380 = vmatprep.subr.mxu0 %v3628_v8 }
 0xde7   : > { %3381 = vmatpush3.msra.mxu0 %v3114_v20 }
 0xde8   : > { %3382 = vmatprep.subr.mxu0 %v3628_v8 }
 0xde9   : > { %3383 = vmatpush3.msra.mxu0 %v3113_v59 }
 0xdea   : > { %3384 = vmatprep.subr.mxu0 %v3628_v8 }
 0xdeb   : > { %3385 = vmatpush3.msra.mxu0 %v3112_v61 }
 0xdec   : > { %3400 = vmatprep.subr.mxu0 %v3628_v8 }
 0xe98   : > { %v1914_v63 = vpop.f32.mrf.mxu1 }
 0xe99   : > { %v1918_v0 = vmul.f32 0.35355338, %v1914_v63  ;;  %v2081_v1 = vpop.f32.mrf.mxu0 }
 0xe9a   : > { %v2085_v2 = vmul.f32 0.35355338, %v2081_v1  ;;  %v3342_v3 = vpop.f32.mrf.mxu1 }
 0xe9b   : > { %v3352_v4 = vpop.f32.mrf.mxu0  ;;  %v1919_v5 = vadd.f32 %v3860_v27, %v1918_v0 }
 0xe9c   : > { %v2086_v6 = vadd.f32 %v3860_v27, %v2085_v2 }
 0xe9d   : > { %v1920_v7 = vsel %vm741_vm2, %v1919_v5, -inf }
 0xe9e   : > { %1921 = vmax.xlane.f32.xlu1 %v1920_v7  ;;  %v2087_v9 = vsel %vm741_vm2, %v2086_v6, -inf }
 0xe9f   : > { %2088 = vmax.xlane.f32.xlu0 %v2087_v9 }
 0xea0   : > { %v2248_v10 = vpop.f32.mrf.mxu0 }
 0xea1   : > { %v2252_v11 = vmul.f32 0.35355338, %v2248_v10 }
 0xea2   : > { %v3362_v12 = vpop.f32.mrf.mxu0 }
 0xea3   : > { %v2253_v13 = vadd.f32 %v3860_v27, %v2252_v11  ;;  %v3117_v12 = vld [vmem:[%s4370_s7 + $0x1] ss:$0 sm:$0xff] }
 0xea4   : > { %v2415_v14 = vpop.f32.mrf.mxu0 }
 0xea5   : > { %v2419_v15 = vmul.f32 0.35355338, %v2415_v14  ;;  %v2254_v16 = vsel %vm741_vm2, %v2253_v13, -inf }
 0xea6   : > { %2255 = vmax.xlane.f32.xlu0 %v2254_v16  ;;  %v3372_v17 = vpop.f32.mrf.mxu0 }
 0xea7   : > { %v2420_v18 = vadd.f32 %v3860_v27, %v2419_v15 }
 0xea9   : > { %v2421_v19 = vsel %vm741_vm2, %v2420_v18, -inf }
 0xeaa   : > { %2422 = vmax.xlane.f32.xlu0 %v2421_v19 }
 0xeaf   : > { %1931 = vrot.lane.b32.xlu1 %v4053_v55, %s4378_s28  ;;  %s4348_s28 = sshll.u32 %s3767_s1, 4 }
 0xf27   : > { %v1922_v21 = vpop.xlane.xlu1 %1921 }
 0xf28   : > { %v1923_v22 = vsub.f32 %v1919_v5, %v1922_v21  ;;  %v2089_v24 = vpop.xlane.xlu0 %2088 }
 0xf29   : > { %v2090_v25 = vsub.f32 %v2086_v6, %v2089_v24 }
 0xf2a   : > { %v1924_v23 = vmul.f32 1.442695, %v1923_v22 }
 0xf2b   : > { %v2091_v26 = vmul.f32 1.442695, %v2090_v25  ;;  %v1932_v28 = vpop.permute.xlu1 %1931  ;;  %v3126_v25 = vld [vmem:[%s4322_s10 + $0x38] sm:$0xff] }
 0xf2c   : > { %3514 = vpow2.f32 %v1924_v23  ;;  %3344 = vmatpush3.msra.mxu1 %v1932_v28  ;;  %v3125_v23 = vld [vmem:[%s4322_s10 + $0x30] sm:$0xff] }
 0xf2d   : > { %3516 = vpow2.f32 %v2091_v26  ;;  %3353 = vmatprep.subr.mxu1 %v3628_v8  ;;  %v3123_v26 = vld [vmem:[%s4322_s10 + $0x20] sm:$0xff] }
 0xf2f   : > { %v2256_v29 = vpop.xlane.xlu0 %2255 }
 0xf30   : > { %v2257_v27 = vsub.f32 %v2253_v13, %v2256_v29 }
 0xf32   : > { %v2258_v30 = vmul.f32 1.442695, %v2257_v27 }
 0xf33   : > { %v2423_v31 = vpop.xlane.xlu0 %2422 }
 0xf34   : > { %3518 = vpow2.f32 %v2258_v30  ;;  %v2424_v32 = vsub.f32 %v2420_v18, %v2423_v31  ;;  %v3121_v31 = vld [vmem:[%s4371_s8 + $0x1] ss:$0 sm:$0xff] }
 0xf36   : > { %v2425_v33 = vmul.f32 1.442695, %v2424_v32 }
 0xf38   : > { %3520 = vpow2.f32 %v2425_v33  ;;  %v3122_v33 = vld [vmem:[%s4321_s9 + $0x1] ss:$0 sm:$0xff] }
 0xf39   : > { %v3515_v34 = vpop.eup %3514 }
 0xf3a   : > { %v3517_v35 = vpop.eup %3516  ;;  %v1926_v36 = vsel %vm741_vm2, %v3515_v34, 0.0 }
 0xf3b   : > { %1927 = vadd.xlane.f32.xlu1 %v1926_v36  ;;  %v2093_v37 = vsel %vm741_vm2, %v3517_v35, 0.0  ;;  %v3137_v36 = vld [vmem:[%s4324_s12 + $0x78] sm:$0xff] }
 0xf3c   : > { %2094 = vadd.xlane.f32.xlu0 %v2093_v37  ;;  %v3136_v37 = vld [vmem:[%s4324_s12 + $0x70] sm:$0xff] }
 0xf41   : > { %v3519_v38 = vpop.eup %3518 }
 0xf42   : > { %v2260_v39 = vsel %vm741_vm2, %v3519_v38, 0.0 }
 0xf43   : > { %2261 = vadd.xlane.f32.xlu1 %v2260_v39  ;;  %v3134_v39 = vld [vmem:[%s4324_s12 + $0x60] sm:$0xff] }
 0xf45   : > { %v3521_v40 = vpop.eup %3520 }
 0xf46   : > { %v2427_v41 = vsel %vm741_vm2, %v3521_v40, 0.0 }
 0xf47   : > { %2428 = vadd.xlane.f32.xlu0 %v2427_v41  ;;  %v3132_v41 = vld [vmem:[%s4324_s12 + $0x50] sm:$0xff] }
 0xf54   : > { %2265 = vrot.lane.b32.xlu1 %v4053_v55, %s4379_s29 }
 0xf58   : > { %2432 = vrot.lane.b32.xlu1 %v4053_v55, %s4380_s22 }
 0xf5d   : > { %2098 = vrot.lane.b32.xlu0 %v4053_v55, %s4381_s27  ;;  %s4382_s27 = smov 8  }
 0xfc4   : > { %v1928_v42 = vpop.xlane.xlu1 %1927 }
 0xfc5   : > { %3522 = vrcp.f32 %v1928_v42  ;;  %v2095_v43 = vpop.xlane.xlu0 %2094  ;;  %v3131_v42 = vld [vmem:[%s4324_s12 + $0x48] sm:$0xff] }
 0xfc6   : > { %3524 = vrcp.f32 %v2095_v43  ;;  %v3130_v43 = vld [vmem:[%s4324_s12 + $0x40] sm:$0xff] }
 0xfcc   : > { %v2262_v44 = vpop.xlane.xlu1 %2261 }
 0xfcd   : > { %3526 = vrcp.f32 %v2262_v44  ;;  %v3128_v44 = vld [vmem:[%s4323_s11 + $0x1] ss:$0 sm:$0xff] }
 0xfd0   : > { %v2429_v45 = vpop.xlane.xlu0 %2428  ;;  %v2266_v50 = vpop.permute.xlu1 %2265 }
 0xfd1   : > { %3528 = vrcp.f32 %v2429_v45 }
 0xfd2   : > { %v3523_v46 = vpop.eup %3522 }
 0xfd3   : > { %v1930_v47 = vmul.f32 %v3523_v46, %v3515_v34  ;;  %v3525_v48 = vpop.eup %3524 }
 0xfd4   : > { %v2099_v49 = vpop.permute.xlu0 %2098  ;;  %v2097_v51 = vmul.f32 %v3525_v48, %v3517_v35  ;;  %v2433_v55 = vpop.permute.xlu1 %2432 }
 0xfd5   : > { %3346 = vmatmul.mubr.msk.f32.vlgmr.msra.gmra.mxu1 %vm741_vm2, %v1930_v47 }
 0xfd6   : > { %3354 = vmatpush3.msra.mxu1 %v2099_v49  ;;  %3355 = vmatprep.mubr.msk.f32.mxu1 %vm3629_vm1, %v3628_v8 }
 0xfd7   : > { %3363 = vmatprep.subr.mxu1 %v3628_v8 }
 0xfd9   : > { %3356 = vmatmul.mubr.msk.f32.vlgmr.msra.gmra.mxu1 %vm741_vm2, %v2097_v51 }
 0xfda   : > { %v3527_v53 = vpop.eup %3526  ;;  %3364 = vmatpush3.msra.mxu1 %v2266_v50  ;;  %3365 = vmatprep.mubr.msk.f32.mxu1 %vm3629_vm1, %v3628_v8 }
 0xfdb   : > { %3373 = vmatprep.subr.mxu1 %v3628_v8  ;;  %v2264_v54 = vmul.f32 %v3527_v53, %v3519_v38  ;;  %v3135_v38 = vld [vmem:[%s4324_s12 + $0x68] sm:$0xff] }
 0xfdd   : > { %3366 = vmatmul.mubr.msk.f32.vlgmr.msra.gmra.mxu1 %vm741_vm2, %v2264_v54 }
 0xfde   : > { %v3529_v56 = vpop.eup %3528  ;;  %3374 = vmatpush3.msra.mxu1 %v2433_v55  ;;  %3375 = vmatprep.mubr.msk.f32.mxu1 %vm3629_vm1, %v3628_v8 }
 0xfdf   : > { %v2431_v57 = vmul.f32 %v3529_v56, %v3521_v40  ;;  %3389 = vmatprep.subr.mxu1 %v3628_v8  ;;  %v3133_v40 = vld [vmem:[%s4324_s12 + $0x58] sm:$0xff] }
 0xfe1   : > { %3376 = vmatmul.mubr.msk.f32.vlgmr.msra.gmra.mxu1 %vm741_vm2, %v2431_v57 }
 0xfe2   : > { %3397 = vmatprep.mubr.msk.f32.mxu1 %vm3629_vm1, %v3628_v8  ;;  %3390 = vmatpush3.msra.mxu1 %v3126_v25 }
 0xfe3   : > { %3391 = vmatprep.subr.mxu1 %v3628_v8 }
 0xfe4   : > { %3392 = vmatpush3.msra.mxu1 %v3125_v23 }
 0xfe5   : > { %3393 = vmatprep.subr.mxu1 %v3628_v8 }
0x1095   : > { %v2003_v60 = vpop.f32.mrf.mxu1 }
0x1097   : > { %v3347_v62 = vpop.f32.mrf.mxu1 }
0x1099   : > { %v2170_v63 = vpop.f32.mrf.mxu1 }
0x109a   : > { %2509 = vrot.lane.b32.xlu1 %v2170_v63, %s4382_s27  ;;  %s2954_s27 = scalar_lea.hbm %s4330_s18, %s4348_s28 }
0x109b   : > { %v3357_v0 = vpop.f32.mrf.mxu1 }
0x109d   : > { %v2337_v1 = vpop.f32.mrf.mxu1 }
0x109e   : > { %2513 = vrot.lane.b32.xlu0 %v2337_v1, %s4383_s23 }
0x109f   : > { %v3367_v2 = vpop.f32.mrf.mxu1 }
0x10a1   : > { %v2504_v3 = vpop.f32.mrf.mxu1 }
0x10a2   : > { %2517 = vrot.lane.b32.xlu1 %v2504_v3, %s4384_s25  ;;  %s4241_s25 = sand.u32 1, %s3618_s30  }
0x10a3   : > { %v3377_v4 = vpop.f32.mrf.mxu1  ;;  %s607_s24 = scalar_lea.vmem [#allocation2], %s4241_s25  ;;  %s2940_s4 = scalar_lea.sflag [#allocation3], %s4241_s25 }
0x10a4   : > { %v2863_v4 = vld [vmem:[%s4328_s16 + $0x18] sm:$0xff]  ;;  %s2956_s23 = sshll.u32 %s607_s24, 4  ;;  %s2957_s23 = int_to_ptr.vmem [resolvable:$true] %s2956_s23 }
0x10a5   : > { %s3536_s2 = scalar_lea.vmem %s2957_s23, 16  ;;  %p3543_p0 = scmp.lt.s32.totalorder %s2957_s23, %s3541_s5 }
0x10a6   : > { %p3537_p11 = scmp.ne.s32.totalorder %s2957_s23, %s3536_s2  ;;  %p3544_p1 = scmp.lt.s32.totalorder %s3542_s6, %s3536_s2 }
0x10a8   : > { %p3538_p12 = pnand %p3537_p11, %p3784_p5  ;;  %p3545_p2 = por %p3544_p1, %p3543_p0 }
0x10aa   : > { %p3539_p13 = pneg %p3538_p12 }
0x10ac   : > { %p3546_p3 = pnand %p3545_p2, %p3539_p13 }
0x110c   : > { %v2510_v5 = vpop.permute.xlu1 %2509 }
0x110d   : > { %v2520_v7 = vsel %vm741_vm2, %v2003_v60, %v2510_v5  ;;  %v2862_v5 = vld [vmem:[%s4328_s16 + $0x10] sm:$0xff] }
0x1110   : > { %v2514_v6 = vpop.permute.xlu0 %2513 }
0x1111   : > { %v2521_v9 = vsel %vm1425_vm3, %v2520_v7, %v2514_v6  ;;  %v2861_v6 = vld [vmem:[%s4328_s16 + $0x8] sm:$0xff]  ;;  %v2860_v7 = vld [vmem:[%s4328_s16] sm:$0xff] }
0x1114   : > { %v2518_v10 = vpop.permute.xlu1 %2517 }
0x1115   : > { %v2522_v11 = vsel %vm1427_vm4, %v2521_v9, %v2518_v10 }
0x1116   : > { %3387 = vmatmul.mubr.msk.f32.vlgmr.msra.gmra.mxu0 %vm625_vm0, %v2522_v11 }
0x1117   : > { %3416 = vmatprep.mubr.msk.f32.mxu0 %vm3629_vm1, %v3628_v8  ;;  %3401 = vmatpush3.msra.mxu0 %v3137_v36 }
0x1118   : > { %3402 = vmatprep.subr.mxu0 %v3628_v8 }
0x1119   : > { %3403 = vmatpush3.msra.mxu0 %v3136_v37 }
0x111a   : > { %3404 = vmatprep.subr.mxu0 %v3628_v8 }
0x111b   : > { %3405 = vmatpush3.msra.mxu0 %v3135_v38 }
0x111c   : > { %3406 = vmatprep.subr.mxu0 %v3628_v8 }
0x111d   : > { %3407 = vmatpush3.msra.mxu0 %v3134_v39 }
0x111e   : > { %3408 = vmatprep.subr.mxu0 %v3628_v8 }
0x111f   : > { %3409 = vmatpush3.msra.mxu0 %v3133_v40 }
0x1120   : > { %3410 = vmatprep.subr.mxu0 %v3628_v8 }
0x1121   : > { %3411 = vmatpush3.msra.mxu0 %v3132_v41 }
0x1122   : > { %3412 = vmatprep.subr.mxu0 %v3628_v8 }
0x1123   : > { %3413 = vmatpush3.msra.mxu0 %v3131_v42 }
0x1124   : > { %3414 = vmatprep.subr.mxu0 %v3628_v8 }
0x1125   : > { %3415 = vmatpush3.msra.mxu0 %v3130_v43 }
0x11d6   : > { %v2605_v13 = vpop.f32.mrf.mxu0 }
0x11d7   : > { %v2606_v14 = vadd.f32 %v3117_v12, %v2605_v13  ;;  %v3143_v13 = vld [vmem:[%s4326_s14 + $0x1] ss:$0 sm:$0xff] }
0x11d8   : > { %v3388_v15 = vpop.f32.mrf.mxu0 }
0x11d9   : > { %v2609_v16 = vadd.f32 %v2606_v14, %v4044_v52  ;;  %v3124_v52 = vld [vmem:[%s4322_s10 + $0x28] sm:$0xff] }
0x11da   : > { %3394 = vmatpush3.msra.mxu1 %v3124_v52 }
0x11db   : > { %v2614_v17 = vsel %vm625_vm0, %v2609_v16, 0.0  ;;  %3395 = vmatprep.subr.mxu1 %v3628_v8 }
0x11dc   : > { %2615 = vadd.xlane.f32.xlu0 %v2614_v17  ;;  %3396 = vmatpush3.msra.mxu1 %v3123_v26 }
0x11dd   : > { %3419 = vmatprep.subr.mxu1 %v3628_v8 }
0x1265   : > { %v2616_v18 = vpop.xlane.xlu0 %2615 }
0x1266   : > { %v2617_v19 = vmul.f32 0.03125, %v2616_v18 }
0x1268   : > { %v2618_v21 = vsub.f32 %v2609_v16, %v2617_v19 }
0x126a   : > { %v2619_v22 = vmul.f32 %v2618_v21, %v2618_v21 }
0x126c   : > { %v2620_v24 = vsel %vm625_vm0, %v2619_v22, 0.0 }
0x126d   : > { %2621 = vadd.xlane.f32.xlu1 %v2620_v24 }
0x12f6   : > { %v2622_v28 = vpop.xlane.xlu1 %2621 }
0x12f7   : > { %v2623_v29 = vmul.f32 0.03125, %v2622_v28 }
0x12f9   : > { %v2624_v27 = vadd.f32 1e-12, %v2623_v29 }
0x12fb   : > { %3530 = vrsqrt.f32 %v2624_v27 }
0x1308   : > { %v3531_v30 = vpop.eup %3530 }
0x1309   : > { %v2626_v32 = vmul.f32 %v3531_v30, %v2618_v21 }
0x130b   : > { %v2633_v34 = vmul.f32 %v3121_v31, %v2626_v32 }
0x130d   : > { %v2640_v35 = vadd.f32 %v3122_v33, %v2633_v34 }
0x130f   : > { %3398 = vmatmul.mubr.msk.f32.vlgmr.msra.gmra.mxu1 %vm625_vm0, %v2640_v35 }
0x1310   : > { %3427 = vmatprep.mubr.msk.f32.mxu1 %vm3629_vm1, %v3628_v8  ;;  %3420 = vmatpush3.msra.mxu1 %v2863_v4 }
0x1311   : > { %3421 = vmatprep.subr.mxu1 %v3628_v8 }
0x1312   : > { %3422 = vmatpush3.msra.mxu1 %v2862_v5 }
0x1313   : > { %3423 = vmatprep.subr.mxu1 %v3628_v8 }
0x1314   : > { %3424 = vmatpush3.msra.mxu1 %v2861_v6 }
0x1315   : > { %3425 = vmatprep.subr.mxu1 %v3628_v8  ;;  %v3144_v8 = vld [vmem:[%s4327_s15 + $0x1] ss:$0 sm:$0xff] }
0x1316   : > { %3426 = vmatpush3.msra.mxu1 %v2860_v7 }
0x13cf   : > { %v2723_v45 = vpop.f32.mrf.mxu1 }
0x13d0   : > { %v2724_v46 = vadd.f32 %v3128_v44, %v2723_v45 }
0x13d1   : > { %v3399_v47 = vpop.f32.mrf.mxu1 }
0x13d2   : > { %v2728_v48 = vmul.f32 0.044715, %v2724_v46  ;;  %v2727_v55 = vmul.f32 0.5, %v2724_v46 }
0x13d4   : > { %v2729_v49 = vmul.f32 %v2728_v48, %v2724_v46 }
0x13d6   : > { %v2730_v50 = vmul.f32 %v2729_v49, %v2724_v46 }
0x13d8   : > { %v2731_v51 = vadd.f32 %v2730_v50, %v2724_v46 }
0x13da   : > { %v2732_v53 = vmul.f32 0.7978846, %v2731_v51 }
0x13dc   : > { %3532 = vtanh.f32 %v2732_v53 }
0x13e9   : > { %v3533_v54 = vpop.eup %3532 }
0x13ea   : > { %v2734_v56 = vadd.f32 1.0, %v3533_v54 }
0x13ec   : > { %v2735_v57 = vmul.f32 %v2734_v56, %v2727_v55 }
0x13ee   : > { %3417 = vmatmul.mubr.msk.f32.vlgmr.msra.gmra.mxu0 %vm1651_vm5, %v2735_v57 }
0x14ae   : > { %v2822_v20 = vpop.f32.mrf.mxu0 }
0x14af   : > { %v2823_v59 = vadd.f32 %v3139_v58, %v2822_v20 }
0x14b0   : > { %v3418_v60 = vpop.f32.mrf.mxu0 }
0x14b1   : > { %v2826_v61 = vadd.f32 %v2823_v59, %v2640_v35 }
0x14b3   : > { %v2831_v62 = vsel %vm625_vm0, %v2826_v61, 0.0 }
0x14b4   : > { %2832 = vadd.xlane.f32.xlu0 %v2831_v62 }
0x153d   : > { %v2833_v63 = vpop.xlane.xlu0 %2832 }
0x153e   : > { %v2834_v0 = vmul.f32 0.03125, %v2833_v63 }
0x1540   : > { %v2835_v1 = vsub.f32 %v2826_v61, %v2834_v0 }
0x1542   : > { %v2836_v2 = vmul.f32 %v2835_v1, %v2835_v1 }
0x1544   : > { %v2837_v3 = vsel %vm625_vm0, %v2836_v2, 0.0 }
0x1545   : > { %2838 = vadd.xlane.f32.xlu0 %v2837_v3 }
0x15ce   : > { %v2839_v9 = vpop.xlane.xlu0 %2838 }
0x15cf   : > { %v2840_v10 = vmul.f32 0.03125, %v2839_v9 }
0x15d1   : > { %v2841_v11 = vadd.f32 1e-12, %v2840_v10 }
0x15d3   : > { %3534 = vrsqrt.f32 %v2841_v11 }
0x15e0   : > { %v3535_v12 = vpop.eup %3534 }
0x15e1   : > { %v2843_v14 = vmul.f32 %v3535_v12, %v2835_v1 }
0x15e3   : > { %v2850_v15 = vmul.f32 %v3143_v13, %v2843_v14 }
0x15e5   : > { %v2857_v16 = vadd.f32 %v3144_v8, %v2850_v15 }
0x15e7   : > { %3428 = vmatmul.mubr.msk.f32.vlgmr.msra.gmra.mxu1 %vm625_vm0, %v2857_v16  ;;  %2859 = vst.msk [vmem:[%s607_s24] sm:$0x1] %vm2858_vm6, %v2857_v16 }
0x15e8   : > { %3549 = shalt.err (!%p3546_p3)
}
0x15e9   : > { %s3550_s7 = scalar_lea.hbm %s2954_s27, 16  ;;  %s3554_s22 = scalar_lea.hbm %s4330_s18, 32 }
0x15ea   : > { %p3551_p4 = scmp.ne.s32.totalorder %s2954_s27, %s3550_s7  ;;  %p3555_p9 = scmp.lt.s32.totalorder %s2954_s27, %s4330_s18 }
0x15eb   : > { %p3556_p10 = scmp.lt.s32.totalorder %s3554_s22, %s3550_s7 }
0x15ec   : > { %p3552_p7 = pnand %p3551_p4, %p3784_p5 }
0x15ed   : > { %p3557_p11 = por %p3556_p10, %p3555_p9 }
0x15ee   : > { %p3553_p8 = pneg %p3552_p7 }
0x15f0   : > { %p3558_p12 = pnand %p3557_p11, %p3553_p8 }
0x15f2   : > { %3561 = shalt.err (!%p3558_p12)
}
0x15f3   : > { %3430 = dma.vmem_to_hbm [thread:$0]  (%p3784_p5), %s2957_s23, 16, %s2954_s27, %s2940_s4   ;;  %v2864_v17 = vld [vmem:[%s4329_s17] sm:$0x1] }
0x15f4   : > { %s613_s2 = scalar_lea.vmem [#allocation4], %s4241_s25  ;;  %s4385_s8 = sshll.u32 %s3767_s1, 4 }
0x15f5   : > { %s2969_s20 = sshll.u32 %s613_s2, 4  ;;  %s4276_s24 = scalar_lea.hbm %s4331_s19, %s4385_s8  ;;  %s2970_s20 = int_to_ptr.vmem [resolvable:$true] %s2969_s20 }
0x15f6   : > { %s2944_s29 = scalar_lea.sflag [#allocation5], %s4241_s25  ;;  %s3562_s22 = scalar_lea.vmem %s2970_s20, 16 }
0x15f7   : > { %p3563_p13 = scmp.ne.s32.totalorder %s2970_s20, %s3562_s22  ;;  %s3645_s4 = smov [#allocation4]  }
0x15f8   : > { %s3566_s27 = sshll.u32 %s3645_s4, 4  ;;  %s3567_s27 = int_to_ptr.vmem [resolvable:$false] %s3566_s27 }
0x15f9   : > { %p3564_p0 = pnand %p3563_p13, %p3784_p5  ;;  %s3568_s23 = scalar_lea.vmem %s3567_s27, 32 }
0x15fa   : > { %p3569_p2 = scmp.lt.s32.totalorder %s2970_s20, %s3567_s27  ;;  %p3570_p3 = scmp.lt.s32.totalorder %s3568_s23, %s3562_s22 }
0x15fb   : > { %p3565_p1 = pneg %p3564_p0 }
0x15fc   : > { %p3571_p4 = por %p3570_p3, %p3569_p2 }
0x15fe   : > { %p3572_p7 = pnand %p3571_p4, %p3565_p1 }
0x16a7   : > { %v2934_v18 = vpop.f32.mrf.mxu1 }
0x16a8   : > { %v2935_v19 = vadd.f32 %v2934_v18, %v2864_v17 }
0x16a9   : > { %v3429_v21 = vpop.f32.mrf.mxu1 }
0x16aa   : > { %2938 = vst [vmem:[%s613_s2] sm:$0x1] %v2935_v19 }
0x16ab   : > { %3575 = shalt.err (!%p3572_p7)
}
0x16ac   : > { %s3576_s1 = scalar_lea.hbm %s4276_s24, 16  ;;  %s3580_s6 = scalar_lea.hbm %s4331_s19, 32 }
0x16ad   : > { %p3577_p8 = scmp.ne.s32.totalorder %s4276_s24, %s3576_s1  ;;  %p3581_p11 = scmp.lt.s32.totalorder %s4276_s24, %s4331_s19 }
0x16ae   : > { %p3582_p12 = scmp.lt.s32.totalorder %s3580_s6, %s3576_s1 }
0x16af   : > { %p3578_p9 = pnand %p3577_p8, %p3784_p5 }
0x16b0   : > { %p3583_p13 = por %p3582_p12, %p3581_p11 }
0x16b1   : > { %p3579_p10 = pneg %p3578_p9 }
0x16b3   : > { %p3584_p0 = pnand %p3583_p13, %p3579_p10 }
0x16b5   : > { %3587 = shalt.err (!%p3584_p0)
}
0x16b6   : > { %3431 = dma.vmem_to_hbm [thread:$0]  (%p3784_p5), %s2970_s20, 16, %s4276_s24, %s2944_s29  }
0x16b7 PF: > { %p3441_p1 = scmp.ge.s32.totalorder %s3626_s21, 2  ;;  %s2981_s7 = sand.u32 1, %s3614_s0  }
0x16b8   : > { %s2982_s28 = scalar_lea.sflag [#allocation3], %s2981_s7 }
0x16b9   : > { %p3435_p2 = pnand %p3441_p1, %p3788_p6 }
0x16bb   : > { %p3436_p3 = pneg %p3435_p2 }
0x16bd   : > { %3605 = dma.done.wait (%p3436_p3), %s2982_s28, 16  }
0x16be   : > { %3607 = vsyncadd (%p3436_p3), %s2982_s28, 4294967280  ;;  %s2990_s22 = scalar_lea.sflag [#allocation5], %s2981_s7 }
0x16bf   : > { %3609 = dma.done.wait (%p3436_p3), %s2990_s22, 16  }
0x16c0   : > { %3611 = vsyncadd (%p3436_p3), %s2990_s22, 4294967280  ;;  %s4386_s21 = sld [smem:[#allocation9_spill]]  ;;  %s4389_s0 = smov %s3618_s30 }
0x16c1   : > { %s4387_s3 = sld [smem:[#allocation8_spill]] }
0x16c2   : > { %s4388_s20 = sld [smem:[#allocation10_spill]] }
0x16c6   : > { %p33_p5 = scmp.ge.s32.totalorder %s4386_s21, 4  }
0x16c7   : > { %s4390_s30 = smov %s4387_s3 }
0x16c8   :  { %35 = sbr.rel (!%p33_p5) target bundleno = 15 (0xf), region = 159 }
0x16cd   :  { %2994 = vsyncpa [#allocation3], 1 }
0x16ce   :  { %2996 = vsyncpa [#allocation3 + $0x1], 1 }
0x16cf   :  { %2997 = vsyncpa [#allocation5], 1 }
0x16d0   :  { %2999 = vsyncpa [#allocation5 + $0x1], 1 }

</bundles_post_ra>
